<compile_context>
chip_gen: v6e
topology: v6e:2x2x1
jax: 0.10.0
libtpu: 0.0.40
codegen_flags: <defaults>
</compile_context>

<pallas_src>
import functools

import jax
import jax.numpy as jnp
from jax import lax
from jax.experimental import pallas as pl
from jax.experimental.pallas import tpu as pltpu

_MIB = 1024 * 1024


def _round_up(v, m):
    return ((v + m - 1) // m) * m


# ---------------------------------------------------------------------------
# One-time parameter preparation (hoist out of the per-step path).
# ---------------------------------------------------------------------------
def prepare_patch_merging_params(reduction_weight, norm_weight, norm_bias, *,
                                 compute_dtype=jnp.float32, dot_dtype=None):
    """Fold the LayerNorm affine params into the reduction weight.

    reduction_weight : [2C_out, 4C]  PyTorch nn.Linear (out, in) layout; the 4C
                                     input axis is in torch order [x0|x1|x2|x3]
    norm_weight/bias : [4C]          same feature order

    Kernel data order: u = even image row = [x0|x2], v = odd row = [x1|x3].
    Returns (wa, wb, bias):
      wa   : [2C, 2C_out]  gamma-folded weight rows for u   (dot dtype)
      wb   : [2C, 2C_out]  gamma-folded weight rows for v   (dot dtype)
      bias : [1, 2C_out]   beta @ W^T, float32 (added after the matmul)
    """
    two_c_out, four_c = reduction_weight.shape
    c = four_c // 4
    w32 = reduction_weight.astype(jnp.float32)
    g32 = norm_weight.astype(jnp.float32)
    b32 = norm_bias.astype(jnp.float32)

    idx_a = jnp.concatenate([jnp.arange(0, c), jnp.arange(2 * c, 3 * c)])
    idx_b = jnp.concatenate([jnp.arange(c, 2 * c), jnp.arange(3 * c, 4 * c)])

    wa = g32[idx_a][:, None] * w32[:, idx_a].T       # (2C, 2C_out)
    wb = g32[idx_b][:, None] * w32[:, idx_b].T       # (2C, 2C_out)
    bias = b32[None, :] @ w32.T                      # (1, 2C_out)

    if dot_dtype is None:
        dot_dtype = (jnp.bfloat16
                     if jnp.dtype(compute_dtype) == jnp.dtype(jnp.bfloat16)
                     else jnp.float32)
    return wa.astype(dot_dtype), wb.astype(dot_dtype), bias.astype(jnp.float32)


# ---------------------------------------------------------------------------
# Kernel
# ---------------------------------------------------------------------------
def _merge_ln_matmul_kernel(x_ref, wa_ref, wb_ref, bias_ref, o_ref, *,
                            eps, inv_width, tokens, low_precision_ln):
    """2x2 patch merge + LayerNorm(4C) + Linear(4C->2C_out, no bias), one tile.

    x_ref    : (tp, 2, W/2, 2C)   tp row-pairs; dim 1 = image-row parity
    wa_ref   : (2C, 2C_out)       gamma-folded weight, even-row features [x0|x2]
    wb_ref   : (2C, 2C_out)       gamma-folded weight, odd-row features  [x1|x3]
    bias_ref : (1, 2C_out)        beta @ W^T (f32)
    o_ref    : (tp * W/2, 2C_out)
    """
    two_c = x_ref.shape[-1]
    # Static parity split (strided VMEM load) + layout-preserving collapse of
    # (tp, W/2, 2C) -> (tokens, 2C); W/2 is a multiple of the sublane packing.
    u = x_ref[:, 0, :, :].reshape(tokens, two_c)     # pieces [x0 | x2]
    v = x_ref[:, 1, :, :].reshape(tokens, two_c)     # pieces [x1 | x3]

    uf = u.astype(jnp.float32)
    vf = v.astype(jnp.float32)
    # One-pass LN statistics over the (virtual) 4C features of each token.
    # (Slightly less stable than two-pass, but f32 accumulation over 4C
    #  features is well within model tolerance.)
    s = jnp.sum(uf, axis=-1, keepdims=True) + jnp.sum(vf, axis=-1, keepdims=True)
    ss = (jnp.sum(uf * uf, axis=-1, keepdims=True)
          + jnp.sum(vf * vf, axis=-1, keepdims=True))
    mean = s * inv_width
    var = ss * inv_width - mean * mean
    inv = lax.rsqrt(var + eps)

    if low_precision_ln:
        # bf16 VPU path (v6e/v7x): halve the wide elementwise work; stats stay f32.
        cd = u.dtype
        un = ((u - mean.astype(cd)) * inv.astype(cd)).astype(wa_ref.dtype)
        vn = ((v - mean.astype(cd)) * inv.astype(cd)).astype(wa_ref.dtype)
    else:
        un = ((uf - mean) * inv).astype(wa_ref.dtype)
        vn = ((vf - mean) * inv).astype(wa_ref.dtype)

    # gamma already folded into wa/wb; beta folded into bias.  Same MACs as one
    # (tokens, 4C) @ (4C, 2C_out) matmul, without a lane concat.
    y = jnp.dot(un, wa_ref[...], preferred_element_type=jnp.float32)
    y = y + jnp.dot(vn, wb_ref[...], preferred_element_type=jnp.float32)
    o_ref[...] = (y + bias_ref[...]).astype(o_ref.dtype)


# ---------------------------------------------------------------------------
# Per-generation planning / tile sizing
# ---------------------------------------------------------------------------
def _tpu_plan():
    """Best-effort per-generation VMEM budget / tile caps."""
    vmem_cap = 128 * _MIB
    kind = ""
    try:
        kind = jax.devices()[0].device_kind.lower()
    except Exception:
        pass
    try:
        info = pltpu.get_tpu_info()
        for name in ("vmem_capacity_bytes", "vmem_bytes", "vmem_size_bytes"):
            val = getattr(info, name, None)
            if val:
                vmem_cap = int(val)
                break
    except Exception:
        pass
    if "v7" in kind or "tpu7" in kind.replace(" ", ""):
        vmem_cap = min(vmem_cap, 64 * _MIB)          # v7x: 64 MiB per TensorCore
    small_vmem = vmem_cap < 100 * _MIB               # v7x-class part
    return dict(
        # Data budget for pipelined blocks; vmem_limit carries extra headroom.
        block_budget_bytes=min(40 * _MIB, vmem_cap // 3),
        vmem_limit_bytes=min(96 * _MIB, (vmem_cap * 3) // 4),
        max_tokens=512 if small_vmem else 1024,
        multi_tc=small_vmem,                         # only v7x parts have 2 TCs
        has_bf16_vpu=("v5 lite" not in kind and "v5e" not in kind),
    )


def _choose_block_pairs(n_pairs, wh, two_c_in, two_c_out, in_bytes, w_bytes,
                        out_bytes, *, block_budget_bytes, max_tokens, multi_tc,
                        weight_buffers=1):
    """Largest row-pair tile whose VMEM blocks fit the data budget."""
    p_in = _round_up(two_c_in, 128)
    p_out = _round_up(two_c_out, 128)
    # Resident constants: wa + wb + bias (single-buffered via pl.Buffered(1)).
    fixed = weight_buffers * (2 * p_in * p_out * w_bytes + p_out * 4)
    per_token = (
        2 * (2 * p_in) * in_bytes       # input block (u+v halves), double-buffered
        + 4 * p_in * 4                  # f32 temporaries (uf, vf, un, vn)
        + 2 * p_out * out_bytes         # output block, double-buffered
        + p_out * 4                     # f32 matmul accumulator
    )
    tokens = max(block_budget_bytes - fixed, 0) // per_token
    # Degenerate-shape guard (huge 4C): never collapse below 128 tokens/step;
    # vmem_limit_bytes above the block budget provides the headroom.
    tokens = min(max(tokens, 128), max_tokens)
    tp = max(1, min(n_pairs, tokens // max(wh, 1)))
    # Feed both TensorCores on 2-TC parts (v7x); 1-TC parts keep one big tile.
    if multi_tc and n_pairs >= 2 and pl.cdiv(n_pairs, tp) == 1:
        tp = (n_pairs + 1) // 2
    return tp


# ---------------------------------------------------------------------------
# Plain-XLA fallback (tiny 2C_out or layout-unfriendly W/2); same folded params.
# ---------------------------------------------------------------------------
def _xla_forward(x, h, w, wa, wb, bias, eps):
    b, _, c = x.shape
    xg = x.reshape(b, h // 2, 2, w // 2, 2 * c)
    u = xg[:, :, 0].astype(jnp.float32)
    v = xg[:, :, 1].astype(jnp.float32)
    inv_width = 1.0 / (4 * c)
    s = u.sum(-1, keepdims=True) + v.sum(-1, keepdims=True)
    ss = (u * u).sum(-1, keepdims=True) + (v * v).sum(-1, keepdims=True)
    mean = s * inv_width
    var = ss * inv_width - mean * mean
    inv = lax.rsqrt(var + eps)
    un = ((u - mean) * inv).astype(wa.dtype)
    vn = ((v - mean) * inv).astype(wa.dtype)
    y = (jnp.dot(un, wa, preferred_element_type=jnp.float32)
         + jnp.dot(vn, wb, preferred_element_type=jnp.float32) + bias)
    return y.reshape(b, (h // 2) * (w // 2), -1).astype(x.dtype)


# ---------------------------------------------------------------------------
# Public forward
# ---------------------------------------------------------------------------
def patch_merging(x, input_resolution, params, *, eps=1e-5, use_pallas=None,
                  block_budget_bytes=None, vmem_limit_bytes=None,
                  max_tokens=None):
    """Forward pass of PatchMerging.

    x      : [B, H*W, C]
    params : output of prepare_patch_merging_params()
    returns: [B, (H/2)*(W/2), 2C]
    """
    wa, wb, bias = params
    h, w = input_resolution
    b, seq_len, c = x.shape
    assert seq_len == h * w, "input feature has wrong size"
    assert h % 2 == 0 and w % 2 == 0, f"x size ({h}*{w}) are not even."
    two_c_in, two_c_out = wa.shape
    assert two_c_in == 2 * c

    wh = w // 2
    n_pairs = b * (h // 2)
    n_tokens = n_pairs * wh

    # The in-kernel (tp, W/2, 2C) -> (tokens, 2C) collapse is only a free,
    # layout-preserving reshape when W/2 is a multiple of the native sublane
    # packing for x's dtype.
    pack = {4: 8, 2: 16, 1: 32}.get(jnp.dtype(x.dtype).itemsize, 8)
    layout_ok = (wh % pack == 0)

    if use_pallas is None:
        # Tiny output widths (< 128 lanes) are pure padding / launch overhead
        # in a Pallas kernel -> let XLA fuse them (perf-review item).
        use_pallas = layout_ok and two_c_out >= 128
    if use_pallas and not layout_ok:
        # TODO(synk): no Pallas path when W/2 is not a multiple of the sublane
        # packing (would need an unsupported in-VMEM relayout); use plain XLA.
        use_pallas = False
    if not use_pallas:
        return _xla_forward(x, h, w, wa, wb, bias, eps)

    plan = _tpu_plan()
    if block_budget_bytes is None:
        block_budget_bytes = plan["block_budget_bytes"]
    if vmem_limit_bytes is None:
        vmem_limit_bytes = plan["vmem_limit_bytes"]
    if max_tokens is None:
        max_tokens = plan["max_tokens"]

    tp = _choose_block_pairs(
        n_pairs, wh, two_c_in, two_c_out,
        in_bytes=jnp.dtype(x.dtype).itemsize,
        w_bytes=jnp.dtype(wa.dtype).itemsize,
        out_bytes=jnp.dtype(x.dtype).itemsize,
        block_budget_bytes=block_budget_bytes, max_tokens=max_tokens,
        multi_tc=plan["multi_tc"], weight_buffers=1)
    tokens_per_step = tp * wh
    grid = (pl.cdiv(n_pairs, tp),)        # ragged last tile handled by masking

    low_precision_ln = (jnp.dtype(x.dtype) == jnp.dtype(jnp.bfloat16)
                        and plan["has_bf16_vpu"])

    # Zero-copy (bitcast) view: [B, H*W, C] -> [B*H/2, 2, W/2, 2C].  No XLA
    # gather/transpose pass and no [N, 4C] intermediate in HBM.
    xp = x.reshape(n_pairs, 2, wh, two_c_in)

    kernel = functools.partial(
        _merge_ln_matmul_kernel, eps=eps, inv_width=1.0 / (4 * c),
        tokens=tokens_per_step, low_precision_ln=low_precision_ln)

    def _call(buffered_constants):
        const_kw = ({"pipeline_mode": pl.Buffered(1)} if buffered_constants
                    else {})
        return pl.pallas_call(
            kernel,
            out_shape=jax.ShapeDtypeStruct((n_tokens, two_c_out), x.dtype),
            grid_spec=pltpu.PrefetchScalarGridSpec(
                num_scalar_prefetch=0,
                grid=grid,
                in_specs=[
                    pl.BlockSpec((tp, 2, wh, two_c_in), lambda i: (i, 0, 0, 0)),
                    pl.BlockSpec((two_c_in, two_c_out), lambda i: (0, 0),
                                 **const_kw),
                    pl.BlockSpec((two_c_in, two_c_out), lambda i: (0, 0),
                                 **const_kw),
                    pl.BlockSpec((1, two_c_out), lambda i: (0, 0), **const_kw),
                ],
                out_specs=pl.BlockSpec((tokens_per_step, two_c_out),
                                       lambda i: (i, 0)),
            ),
            compiler_params=pltpu.CompilerParams(
                dimension_semantics=("parallel",),
                vmem_limit_bytes=vmem_limit_bytes,
            ),
        )(xp, wa, wb, bias)

    try:
        # Constant operands single-buffered: their index_map never changes, so
        # double-buffering them only wastes VMEM the row tile could use.
        out = _call(buffered_constants=True)
    except Exception:
        # This jax/Mosaic build rejects pipeline_mode=pl.Buffered(1); fall back
        # to default double-buffered constants (correctness identical).
        out = _call(buffered_constants=False)

    return out.reshape(b, (h // 2) * wh, two_c_out)


# ---------------------------------------------------------------------------
# Pure-JAX reference mirroring the PyTorch forward (torch param layout).
# ---------------------------------------------------------------------------
def _reference(x, input_resolution, reduction_weight, norm_weight, norm_bias,
               eps=1e-5):
    h, w = input_resolution
    b, _, c = x.shape
    xg = x.reshape(b, h, w, c)
    x0 = xg[:, 0::2, 0::2, :]
    x1 = xg[:, 1::2, 0::2, :]
    x2 = xg[:, 0::2, 1::2, :]
    x3 = xg[:, 1::2, 1::2, :]
    xm = jnp.concatenate([x0, x1, x2, x3], axis=-1).reshape(b, -1, 4 * c)
    mean = jnp.mean(xm, axis=-1, keepdims=True)
    var = jnp.mean((xm - mean) ** 2, axis=-1, keepdims=True)
    xn = (xm - mean) / jnp.sqrt(var + eps)
    xn = xn * norm_weight + norm_bias
    return xn @ reduction_weight.T


if __name__ == "__main__":
    # Module config: input_resolution=(16, 16), dim=4
    B, H, W, DIM = 2, 16, 16, 4

    key = jax.random.PRNGKey(0)
    kx, kw, kg, kb = jax.random.split(key, 4)

    x = jax.random.normal(kx, (B, H * W, DIM), dtype=jnp.float32)
    # nn.Linear(4*dim, 2*dim, bias=False) -> weight (2*dim, 4*dim)
    reduction_weight = jax.random.normal(kw, (2 * DIM, 4 * DIM),
                                         jnp.float32) * 0.1
    # nn.LayerNorm(4*dim): random affine params so that path is exercised.
    norm_weight = 1.0 + 0.1 * jax.random.normal(kg, (4 * DIM,), jnp.float32)
    norm_bias = 0.1 * jax.random.normal(kb, (4 * DIM,), jnp.float32)

    # One-time parameter prep (hoisted out of the per-call path).
    params = prepare_patch_merging_params(reduction_weight, norm_weight,
                                          norm_bias, compute_dtype=x.dtype)
    params = jax.tree_util.tree_map(jax.block_until_ready, params)

    # use_pallas=True: the demo's 2C_out=8 would auto-dispatch to plain XLA
    # (tiny-C guard); force the Pallas path so the kernel itself is validated.
    out = patch_merging(x, (H, W), params, use_pallas=True)
    out = jax.block_until_ready(out)

    ref = _reference(x, (H, W), reduction_weight, norm_weight, norm_bias)
    assert out.shape == (B, (H // 2) * (W // 2), 2 * DIM), out.shape
    max_err = float(jnp.max(jnp.abs(out - ref)))
    assert jnp.allclose(out, ref, atol=2e-4, rtol=2e-4), max_err

    print("KERNEL_OK")
</pallas_src>

<mosaic_0001>
module attributes {stable_mosaic.version = 11 : i64} {
  func.func @_merge_ln_matmul_kernel(%arg0: i32, %arg1: memref<16x2x8x8xf32, #tpu.memory_space<vmem>>, %arg2: memref<8x8xf32, #tpu.memory_space<vmem>>, %arg3: memref<8x8xf32, #tpu.memory_space<vmem>>, %arg4: memref<1x8xf32, #tpu.memory_space<vmem>>, %arg5: memref<128x8xf32, #tpu.memory_space<vmem>>) attributes {dimension_semantics = [#tpu.dimension_semantics<parallel>], iteration_bounds = array<i64: 1>, scalar_prefetch = 0 : i64, scratch_operands = 0 : i64, tpu.core_type = #tpu.core_type<tc>, window_params = [{transform_indices = @transform_0, window_bounds = array<i64: 16, 2, 8, 8>}, {pipeline_mode = #tpu.pipeline_mode<synchronous>, transform_indices = @transform_1, window_bounds = array<i64: 8, 8>}, {pipeline_mode = #tpu.pipeline_mode<synchronous>, transform_indices = @transform_2, window_bounds = array<i64: 8, 8>}, {pipeline_mode = #tpu.pipeline_mode<synchronous>, transform_indices = @transform_3, window_bounds = array<i64: 1, 8>}, {transform_indices = @transform_4, window_bounds = array<i64: 128, 8>}]} {
    %c0 = arith.constant 0 : index
    %c0_0 = arith.constant 0 : index
    %c0_1 = arith.constant 0 : index
    %c0_2 = arith.constant 0 : index
    %0 = vector.load %arg1[%c0, %c0_0, %c0_1, %c0_2] : memref<16x2x8x8xf32, #tpu.memory_space<vmem>>, vector<16x1x8x8xf32>
    %1 = vector.shape_cast %0 : vector<16x1x8x8xf32> to vector<16x8x8xf32>
    %2 = vector.shape_cast %1 : vector<16x8x8xf32> to vector<128x8xf32>
    %c0_3 = arith.constant 0 : index
    %c1 = arith.constant 1 : index
    %c0_4 = arith.constant 0 : index
    %c0_5 = arith.constant 0 : index
    %3 = vector.load %arg1[%c0_3, %c1, %c0_4, %c0_5] : memref<16x2x8x8xf32, #tpu.memory_space<vmem>>, vector<16x1x8x8xf32>
    %4 = vector.shape_cast %3 : vector<16x1x8x8xf32> to vector<16x8x8xf32>
    %5 = vector.shape_cast %4 : vector<16x8x8xf32> to vector<128x8xf32>
    %cst = arith.constant dense<0.000000e+00> : vector<128xf32>
    %6 = vector.multi_reduction <add>, %2, %cst [1] : vector<128x8xf32> to vector<128xf32>
    %7 = vector.shape_cast %6 : vector<128xf32> to vector<128x1xf32>
    %cst_6 = arith.constant dense<0.000000e+00> : vector<128xf32>
    %8 = vector.multi_reduction <add>, %5, %cst_6 [1] : vector<128x8xf32> to vector<128xf32>
    %9 = vector.shape_cast %8 : vector<128xf32> to vector<128x1xf32>
    %10 = arith.addf %7, %9 : vector<128x1xf32>
    %11 = arith.mulf %2, %2 : vector<128x8xf32>
    %cst_7 = arith.constant dense<0.000000e+00> : vector<128xf32>
    %12 = vector.multi_reduction <add>, %11, %cst_7 [1] : vector<128x8xf32> to vector<128xf32>
    %13 = vector.shape_cast %12 : vector<128xf32> to vector<128x1xf32>
    %14 = arith.mulf %5, %5 : vector<128x8xf32>
    %cst_8 = arith.constant dense<0.000000e+00> : vector<128xf32>
    %15 = vector.multi_reduction <add>, %14, %cst_8 [1] : vector<128x8xf32> to vector<128xf32>
    %16 = vector.shape_cast %15 : vector<128xf32> to vector<128x1xf32>
    %17 = arith.addf %13, %16 : vector<128x1xf32>
    %cst_9 = arith.constant 6.250000e-02 : f32
    %18 = vector.broadcast %cst_9 : f32 to vector<128x1xf32>
    %19 = arith.mulf %10, %18 : vector<128x1xf32>
    %cst_10 = arith.constant 6.250000e-02 : f32
    %20 = vector.broadcast %cst_10 : f32 to vector<128x1xf32>
    %21 = arith.mulf %17, %20 : vector<128x1xf32>
    %22 = arith.mulf %19, %19 : vector<128x1xf32>
    %23 = arith.subf %21, %22 : vector<128x1xf32>
    %cst_11 = arith.constant 9.99999974E-6 : f32
    %24 = vector.broadcast %cst_11 : f32 to vector<128x1xf32>
    %25 = arith.addf %23, %24 : vector<128x1xf32>
    %26 = math.rsqrt %25 : vector<128x1xf32>
    %27 = vector.broadcast %19 : vector<128x1xf32> to vector<128x8xf32>
    %28 = arith.subf %2, %27 : vector<128x8xf32>
    %29 = vector.broadcast %26 : vector<128x1xf32> to vector<128x8xf32>
    %30 = arith.mulf %28, %29 : vector<128x8xf32>
    %31 = vector.broadcast %19 : vector<128x1xf32> to vector<128x8xf32>
    %32 = arith.subf %5, %31 : vector<128x8xf32>
    %33 = vector.broadcast %26 : vector<128x1xf32> to vector<128x8xf32>
    %34 = arith.mulf %32, %33 : vector<128x8xf32>
    %c0_12 = arith.constant 0 : index
    %c0_13 = arith.constant 0 : index
    %35 = vector.load %arg2[%c0_12, %c0_13] : memref<8x8xf32, #tpu.memory_space<vmem>>, vector<8x8xf32>
    %cst_14 = arith.constant dense<0.000000e+00> : vector<128x8xf32>
    %36 = tpu.matmul %30, %35, %cst_14 {dimension_numbers = #tpu.dot_dimension_numbers<[1], [0], [0], [1], [0, 0, 1, 1], [], []>} : vector<128x8xf32>, vector<8x8xf32>, vector<128x8xf32> -> vector<128x8xf32>
    %c0_15 = arith.constant 0 : index
    %c0_16 = arith.constant 0 : index
    %37 = vector.load %arg3[%c0_15, %c0_16] : memref<8x8xf32, #tpu.memory_space<vmem>>, vector<8x8xf32>
    %cst_17 = arith.constant dense<0.000000e+00> : vector<128x8xf32>
    %38 = tpu.matmul %34, %37, %cst_17 {dimension_numbers = #tpu.dot_dimension_numbers<[1], [0], [0], [1], [0, 0, 1, 1], [], []>} : vector<128x8xf32>, vector<8x8xf32>, vector<128x8xf32> -> vector<128x8xf32>
    %39 = arith.addf %36, %38 : vector<128x8xf32>
    %c0_18 = arith.constant 0 : index
    %c0_19 = arith.constant 0 : index
    %40 = vector.load %arg4[%c0_18, %c0_19] : memref<1x8xf32, #tpu.memory_space<vmem>>, vector<1x8xf32>
    %41 = vector.broadcast %40 : vector<1x8xf32> to vector<128x8xf32>
    %42 = arith.addf %39, %41 : vector<128x8xf32>
    %c0_20 = arith.constant 0 : index
    %c0_21 = arith.constant 0 : index
    %43 = vector.load %arg5[%c0_20, %c0_21] : memref<128x8xf32, #tpu.memory_space<vmem>>, vector<128x8xf32>
    tpu.vector_store %arg5[%c0_20, %c0_21], %42 {strides = array<i32>} : memref<128x8xf32, #tpu.memory_space<vmem>>, vector<128x8xf32>,
    return
  }
  func.func @transform_0(%arg0: i32) -> (i32, i32, i32, i32) {
    %c0_i32 = arith.constant 0 : i32
    %c0_i32_0 = arith.constant 0 : i32
    %c0_i32_1 = arith.constant 0 : i32
    %c0_i32_2 = arith.constant 0 : i32
    return %arg0, %c0_i32, %c0_i32_0, %c0_i32_1 : i32, i32, i32, i32
  }
  func.func @transform_1(%arg0: i32) -> (i32, i32) {
    %c0_i32 = arith.constant 0 : i32
    %c0_i32_0 = arith.constant 0 : i32
    %c0_i32_1 = arith.constant 0 : i32
    return %c0_i32, %c0_i32_0 : i32, i32
  }
  func.func @transform_2(%arg0: i32) -> (i32, i32) {
    %c0_i32 = arith.constant 0 : i32
    %c0_i32_0 = arith.constant 0 : i32
    %c0_i32_1 = arith.constant 0 : i32
    return %c0_i32, %c0_i32_0 : i32, i32
  }
  func.func @transform_3(%arg0: i32) -> (i32, i32) {
    %c0_i32 = arith.constant 0 : i32
    %c0_i32_0 = arith.constant 0 : i32
    %c0_i32_1 = arith.constant 0 : i32
    return %c0_i32, %c0_i32_0 : i32, i32
  }
  func.func @transform_4(%arg0: i32) -> (i32, i32) {
    %c0_i32 = arith.constant 0 : i32
    %c0_i32_0 = arith.constant 0 : i32
    return %arg0, %c0_i32 : i32, i32
  }
}

module attributes {stable_mosaic.version = 11 : i64} {
  func.func @_merge_ln_matmul_kernel(%arg0: i32, %arg1: memref<16x2x8x8xf32, #tpu.memory_space<vmem>>, %arg2: memref<8x8xf32, #tpu.memory_space<vmem>>, %arg3: memref<8x8xf32, #tpu.memory_space<vmem>>, %arg4: memref<1x8xf32, #tpu.memory_space<vmem>>, %arg5: memref<128x8xf32, #tpu.memory_space<vmem>>) attributes {dimension_semantics = [#tpu.dimension_semantics<parallel>], iteration_bounds = array<i64: 1>, scalar_prefetch = 0 : i64, scratch_operands = 0 : i64, tpu.core_type = #tpu.core_type<tc>, window_params = [{transform_indices = @transform_0, window_bounds = array<i64: 16, 2, 8, 8>}, {pipeline_mode = #tpu.pipeline_mode<synchronous>, transform_indices = @transform_1, window_bounds = array<i64: 8, 8>}, {pipeline_mode = #tpu.pipeline_mode<synchronous>, transform_indices = @transform_2, window_bounds = array<i64: 8, 8>}, {pipeline_mode = #tpu.pipeline_mode<synchronous>, transform_indices = @transform_3, window_bounds = array<i64: 1, 8>}, {transform_indices = @transform_4, window_bounds = array<i64: 128, 8>}]} {
    %c0 = arith.constant 0 : index
    %c0_0 = arith.constant 0 : index
    %c0_1 = arith.constant 0 : index
    %c0_2 = arith.constant 0 : index
    %0 = vector.load %arg1[%c0, %c0_0, %c0_1, %c0_2] : memref<16x2x8x8xf32, #tpu.memory_space<vmem>>, vector<16x1x8x8xf32>
    %1 = vector.shape_cast %0 : vector<16x1x8x8xf32> to vector<16x8x8xf32>
    %2 = vector.shape_cast %1 : vector<16x8x8xf32> to vector<128x8xf32>
    %c0_3 = arith.constant 0 : index
    %c1 = arith.constant 1 : index
    %c0_4 = arith.constant 0 : index
    %c0_5 = arith.constant 0 : index
    %3 = vector.load %arg1[%c0_3, %c1, %c0_4, %c0_5] : memref<16x2x8x8xf32, #tpu.memory_space<vmem>>, vector<16x1x8x8xf32>
    %4 = vector.shape_cast %3 : vector<16x1x8x8xf32> to vector<16x8x8xf32>
    %5 = vector.shape_cast %4 : vector<16x8x8xf32> to vector<128x8xf32>
    %cst = arith.constant dense<0.000000e+00> : vector<128xf32>
    %6 = vector.multi_reduction <add>, %2, %cst [1] : vector<128x8xf32> to vector<128xf32>
    %7 = vector.shape_cast %6 : vector<128xf32> to vector<128x1xf32>
    %cst_6 = arith.constant dense<0.000000e+00> : vector<128xf32>
    %8 = vector.multi_reduction <add>, %5, %cst_6 [1] : vector<128x8xf32> to vector<128xf32>
    %9 = vector.shape_cast %8 : vector<128xf32> to vector<128x1xf32>
    %10 = arith.addf %7, %9 : vector<128x1xf32>
    %11 = arith.mulf %2, %2 : vector<128x8xf32>
    %cst_7 = arith.constant dense<0.000000e+00> : vector<128xf32>
    %12 = vector.multi_reduction <add>, %11, %cst_7 [1] : vector<128x8xf32> to vector<128xf32>
    %13 = vector.shape_cast %12 : vector<128xf32> to vector<128x1xf32>
    %14 = arith.mulf %5, %5 : vector<128x8xf32>
    %cst_8 = arith.constant dense<0.000000e+00> : vector<128xf32>
    %15 = vector.multi_reduction <add>, %14, %cst_8 [1] : vector<128x8xf32> to vector<128xf32>
    %16 = vector.shape_cast %15 : vector<128xf32> to vector<128x1xf32>
    %17 = arith.addf %13, %16 : vector<128x1xf32>
    %cst_9 = arith.constant 6.250000e-02 : f32
    %18 = vector.broadcast %cst_9 : f32 to vector<128x1xf32>
    %19 = arith.mulf %10, %18 : vector<128x1xf32>
    %cst_10 = arith.constant 6.250000e-02 : f32
    %20 = vector.broadcast %cst_10 : f32 to vector<128x1xf32>
    %21 = arith.mulf %17, %20 : vector<128x1xf32>
    %22 = arith.mulf %19, %19 : vector<128x1xf32>
    %23 = arith.subf %21, %22 : vector<128x1xf32>
    %cst_11 = arith.constant 9.99999974E-6 : f32
    %24 = vector.broadcast %cst_11 : f32 to vector<128x1xf32>
    %25 = arith.addf %23, %24 : vector<128x1xf32>
    %26 = math.rsqrt %25 : vector<128x1xf32>
    %27 = vector.broadcast %19 : vector<128x1xf32> to vector<128x8xf32>
    %28 = arith.subf %2, %27 : vector<128x8xf32>
    %29 = vector.broadcast %26 : vector<128x1xf32> to vector<128x8xf32>
    %30 = arith.mulf %28, %29 : vector<128x8xf32>
    %31 = vector.broadcast %19 : vector<128x1xf32> to vector<128x8xf32>
    %32 = arith.subf %5, %31 : vector<128x8xf32>
    %33 = vector.broadcast %26 : vector<128x1xf32> to vector<128x8xf32>
    %34 = arith.mulf %32, %33 : vector<128x8xf32>
    %c0_12 = arith.constant 0 : index
    %c0_13 = arith.constant 0 : index
    %35 = vector.load %arg2[%c0_12, %c0_13] : memref<8x8xf32, #tpu.memory_space<vmem>>, vector<8x8xf32>
    %cst_14 = arith.constant dense<0.000000e+00> : vector<128x8xf32>
    %36 = tpu.matmul %30, %35, %cst_14 {dimension_numbers = #tpu.dot_dimension_numbers<[1], [0], [0], [1], [0, 0, 1, 1], [], []>} : vector<128x8xf32>, vector<8x8xf32>, vector<128x8xf32> -> vector<128x8xf32>
    %c0_15 = arith.constant 0 : index
    %c0_16 = arith.constant 0 : index
    %37 = vector.load %arg3[%c0_15, %c0_16] : memref<8x8xf32, #tpu.memory_space<vmem>>, vector<8x8xf32>
    %cst_17 = arith.constant dense<0.000000e+00> : vector<128x8xf32>
    %38 = tpu.matmul %34, %37, %cst_17 {dimension_numbers = #tpu.dot_dimension_numbers<[1], [0], [0], [1], [0, 0, 1, 1], [], []>} : vector<128x8xf32>, vector<8x8xf32>, vector<128x8xf32> -> vector<128x8xf32>
    %39 = arith.addf %36, %38 : vector<128x8xf32>
    %c0_18 = arith.constant 0 : index
    %c0_19 = arith.constant 0 : index
    %40 = vector.load %arg4[%c0_18, %c0_19] : memref<1x8xf32, #tpu.memory_space<vmem>>, vector<1x8xf32>
    %41 = vector.broadcast %40 : vector<1x8xf32> to vector<128x8xf32>
    %42 = arith.addf %39, %41 : vector<128x8xf32>
    %c0_20 = arith.constant 0 : index
    %c0_21 = arith.constant 0 : index
    %43 = vector.load %arg5[%c0_20, %c0_21] : memref<128x8xf32, #tpu.memory_space<vmem>>, vector<128x8xf32>
    tpu.vector_store %arg5[%c0_20, %c0_21], %42 {strides = array<i32>} : memref<128x8xf32, #tpu.memory_space<vmem>>, vector<128x8xf32>,
    return
  }
  func.func @transform_0(%arg0: i32) -> (i32, i32, i32, i32) {
    %c0_i32 = arith.constant 0 : i32
    %c0_i32_0 = arith.constant 0 : i32
    %c0_i32_1 = arith.constant 0 : i32
    %c0_i32_2 = arith.constant 0 : i32
    return %arg0, %c0_i32, %c0_i32_0, %c0_i32_1 : i32, i32, i32, i32
  }
  func.func @transform_1(%arg0: i32) -> (i32, i32) {
    %c0_i32 = arith.constant 0 : i32
    %c0_i32_0 = arith.constant 0 : i32
    %c0_i32_1 = arith.constant 0 : i32
    return %c0_i32, %c0_i32_0 : i32, i32
  }
  func.func @transform_2(%arg0: i32) -> (i32, i32) {
    %c0_i32 = arith.constant 0 : i32
    %c0_i32_0 = arith.constant 0 : i32
    %c0_i32_1 = arith.constant 0 : i32
    return %c0_i32, %c0_i32_0 : i32, i32
  }
  func.func @transform_3(%arg0: i32) -> (i32, i32) {
    %c0_i32 = arith.constant 0 : i32
    %c0_i32_0 = arith.constant 0 : i32
    %c0_i32_1 = arith.constant 0 : i32
    return %c0_i32, %c0_i32_0 : i32, i32
  }
  func.func @transform_4(%arg0: i32) -> (i32, i32) {
    %c0_i32 = arith.constant 0 : i32
    %c0_i32_0 = arith.constant 0 : i32
    return %arg0, %c0_i32 : i32, i32
  }
}

</mosaic_0001>

<bundles_post_ra>
// kernel: tpu_custom_call.1
= control target key start
LH: loop header
LB: loop body
LE: loop exit
PB: predicated region body
PF: predicated region fallthrough
CT: control target
= control target key end

     0   :  { %vm50_vm0 = vcmask 64512   ;;  %s1601_s0 = inlined_call_operand.vmem [shape: f32[16,2,8,8], index: 0, kind: input, shape index: {}]   ;;  %s1602_s2 = inlined_call_operand.vmem [shape: f32[8,8], index: 2, kind: input, shape index: {}]   ;;  %s1603_s1 = inlined_call_operand.vmem [shape: f32[8,8], index: 1, kind: input, shape index: {}]   ;;  %s1604_s3 = inlined_call_operand.vmem [shape: f32[1,8], index: 3, kind: input, shape index: {}]   ;;  %s1605_s4 = inlined_call_operand.vmem [shape: f32[128,8], index: 4, kind: output, shape index: {}]  }
   0x1   :  { %v1093_v0 = vld [vmem:[%s1601_s0 + $0x10] sm:$0xff]  ;;  %v1098_v1 = vld [vmem:[%s1601_s0] sm:$0xff]  ;;  %v1103_v2 = vld [vmem:[%s1601_s0 + $0x18] sm:$0xff] }
   0x2   :  { %v54_v3 = vsel %vm50_vm0, %v1093_v0, 0.0  ;;  %v51_v4 = vsel %vm50_vm0, %v1098_v1, 0.0  ;;  %v1112_v5 = vld [vmem:[%s1601_s0 + $0x8] sm:$0xff]  ;;  %v102_v6 = vsel %vm50_vm0, %v1103_v2, 0.0  ;;  %v163_v9 = vmul.f32 %v1098_v1, %v1098_v1  ;;  %v1138_v17 = vld [vmem:[%s1601_s0 + $0x20] sm:$0xff]  ;;  %v1147_v20 = vld [vmem:[%s1601_s0 + $0x38] sm:$0xff] }
   0x3   :  { %55 = vadd.xlane.f32.xlu1 %v54_v3  ;;  %52 = vadd.xlane.f32.xlu0 %v51_v4  ;;  %v99_v7 = vsel %vm50_vm0, %v1112_v5, 0.0  ;;  %v227_v8 = vmul.f32 %v1112_v5, %v1112_v5  ;;  %v228_v12 = vmul.f32 %v1103_v2, %v1103_v2  ;;  %v164_v13 = vmul.f32 %v1093_v0, %v1093_v0  ;;  %v1133_v16 = vld [vmem:[%s1601_s0 + $0x28] sm:$0xff]  ;;  %v1152_v21 = vld [vmem:[%s1601_s0 + $0x30] sm:$0xff]  ;;  %v1178_v33 = vld [vmem:[%s1601_s0 + $0x40] sm:$0xff] }
   0x4   :  { %v179_v11 = vsel %vm50_vm0, %v163_v9, 0.0  ;;  %v105_v18 = vsel %vm50_vm0, %v1133_v16, 0.0  ;;  %v57_v19 = vsel %vm50_vm0, %v1138_v17, 0.0  ;;  %v108_v22 = vsel %vm50_vm0, %v1147_v20, 0.0  ;;  %v1173_v32 = vld [vmem:[%s1601_s0 + $0x48] sm:$0xff]  ;;  %v1187_v36 = vld [vmem:[%s1601_s0 + $0x58] sm:$0xff] }
   0x5   :  { %v243_v10 = vsel %vm50_vm0, %v227_v8, 0.0  ;;  %v246_v14 = vsel %vm50_vm0, %v228_v12, 0.0  ;;  %v182_v15 = vsel %vm50_vm0, %v164_v13, 0.0  ;;  %v60_v23 = vsel %vm50_vm0, %v1152_v21, 0.0  ;;  %v1192_v37 = vld [vmem:[%s1601_s0 + $0x50] sm:$0xff]  ;;  %v1213_v48 = vld [vmem:[%s1601_s0 + $0x68] sm:$0xff] }
   0x6   :  { %v229_v24 = vmul.f32 %v1133_v16, %v1133_v16  ;;  %v165_v25 = vmul.f32 %v1138_v17, %v1138_v17  ;;  %v230_v28 = vmul.f32 %v1147_v20, %v1147_v20  ;;  %v166_v29 = vmul.f32 %v1152_v21, %v1152_v21  ;;  %v1218_v49 = vld [vmem:[%s1601_s0 + $0x60] sm:$0xff]  ;;  %v1233_v54 = vld [vmem:[%s1601_s0 + $0x78] sm:$0xff]  ;;  %v1238_v55 = vld [vmem:[%s1601_s0 + $0x70] sm:$0xff] }
   0x7   :  { %103 = vadd.xlane.f32.xlu1 %v102_v6  ;;  %100 = vadd.xlane.f32.xlu0 %v99_v7  ;;  %v111_v34 = vsel %vm50_vm0, %v1173_v32, 0.0  ;;  %v63_v35 = vsel %vm50_vm0, %v1178_v33, 0.0  ;;  %v114_v38 = vsel %vm50_vm0, %v1187_v36, 0.0  ;;  %v66_v39 = vsel %vm50_vm0, %v1192_v37, 0.0  ;;  %v468_v50 = vld [vmem:[%s1602_s2] sm:$0xff]  ;;  %v1259_v6 = vld [vmem:[%s1601_s0 + $0x88] sm:$0xff] }
   0x8   :  { %v249_v26 = vsel %vm50_vm0, %v229_v24, 0.0  ;;  %v185_v27 = vsel %vm50_vm0, %v165_v25, 0.0  ;;  %v252_v30 = vsel %vm50_vm0, %v230_v28, 0.0  ;;  %v188_v31 = vsel %vm50_vm0, %v166_v29, 0.0  ;;  %v467_v51 = vld [vmem:[%s1603_s1] sm:$0xff]  ;;  %981 = vmatprep.subr.mxu0 %v468_v50 }
   0x9   :  { %v231_v40 = vmul.f32 %v1173_v32, %v1173_v32  ;;  %v167_v41 = vmul.f32 %v1178_v33, %v1178_v33  ;;  %v232_v44 = vmul.f32 %v1187_v36, %v1187_v36  ;;  %v168_v45 = vmul.f32 %v1192_v37, %v1192_v37  ;;  %1007 = vmatprep.subr.mxu1 %v467_v51  ;;  %v1264_v7 = vld [vmem:[%s1601_s0 + $0x80] sm:$0xff] }
   0xa   :  { %v117_v52 = vsel %vm50_vm0, %v1213_v48, 0.0  ;;  %v69_v53 = vsel %vm50_vm0, %v1218_v49, 0.0  ;;  %982 = vmatpush3.msra.mxu0 %v468_v50  ;;  %1008 = vmatpush3.msra.mxu1 %v467_v51  ;;  %v120_v56 = vsel %vm50_vm0, %v1233_v54, 0.0  ;;  %v72_v57 = vsel %vm50_vm0, %v1238_v55, 0.0 }
   0xb   :  { %244 = vadd.xlane.f32.xlu1 %v243_v10  ;;  %180 = vadd.xlane.f32.xlu0 %v179_v11  ;;  %v255_v42 = vsel %vm50_vm0, %v231_v40, 0.0  ;;  %v191_v43 = vsel %vm50_vm0, %v167_v41, 0.0  ;;  %v258_v46 = vsel %vm50_vm0, %v232_v44, 0.0  ;;  %v194_v47 = vsel %vm50_vm0, %v168_v45, 0.0  ;;  %v1273_v10 = vld [vmem:[%s1601_s0 + $0x98] sm:$0xff]  ;;  %v1278_v11 = vld [vmem:[%s1601_s0 + $0x90] sm:$0xff] }
   0xc   :  { %v233_v58 = vmul.f32 %v1213_v48, %v1213_v48  ;;  %v169_v59 = vmul.f32 %v1218_v49, %v1218_v49  ;;  %v234_v62 = vmul.f32 %v1233_v54, %v1233_v54  ;;  %v170_v63 = vmul.f32 %v1238_v55, %v1238_v55 }
   0xd   :  { %v123_v8 = vsel %vm50_vm0, %v1259_v6, 0.0  ;;  %v75_v9 = vsel %vm50_vm0, %v1264_v7, 0.0  ;;  %v126_v12 = vsel %vm50_vm0, %v1273_v10, 0.0  ;;  %v78_v13 = vsel %vm50_vm0, %v1278_v11, 0.0 }
   0xe   :  { %v261_v60 = vsel %vm50_vm0, %v233_v58, 0.0  ;;  %v197_v61 = vsel %vm50_vm0, %v169_v59, 0.0  ;;  %v264_v3 = vsel %vm50_vm0, %v234_v62, 0.0  ;;  %v200_v4 = vsel %vm50_vm0, %v170_v63, 0.0 }
   0xf   :  { %247 = vadd.xlane.f32.xlu1 %v246_v14  ;;  %183 = vadd.xlane.f32.xlu0 %v182_v15  ;;  %v235_v14 = vmul.f32 %v1259_v6, %v1259_v6  ;;  %v171_v15 = vmul.f32 %v1264_v7, %v1264_v7 }
  0x13   :  { %106 = vadd.xlane.f32.xlu1 %v105_v18  ;;  %58 = vadd.xlane.f32.xlu0 %v57_v19  ;;  %v267_v18 = vsel %vm50_vm0, %v235_v14, 0.0  ;;  %v203_v19 = vsel %vm50_vm0, %v171_v15, 0.0  ;;  %v1393_v14 = vld [vmem:[%s1601_s0 + $0xf8] sm:$0xff]  ;;  %v1398_v15 = vld [vmem:[%s1601_s0 + $0xf0] sm:$0xff] }
  0x17   :  { %109 = vadd.xlane.f32.xlu1 %v108_v22  ;;  %61 = vadd.xlane.f32.xlu0 %v60_v23  ;;  %v236_v22 = vmul.f32 %v1273_v10, %v1273_v10  ;;  %v172_v23 = vmul.f32 %v1278_v11, %v1278_v11 }
  0x19   :  { %v270_v24 = vsel %vm50_vm0, %v236_v22, 0.0  ;;  %v206_v25 = vsel %vm50_vm0, %v172_v23, 0.0 }
  0x1b   :  { %250 = vadd.xlane.f32.xlu1 %v249_v26  ;;  %186 = vadd.xlane.f32.xlu0 %v185_v27  ;;  %v1299_v26 = vld [vmem:[%s1601_s0 + $0xa8] sm:$0xff]  ;;  %v1304_v27 = vld [vmem:[%s1601_s0 + $0xa0] sm:$0xff] }
  0x1c   :  { %v129_v28 = vsel %vm50_vm0, %v1299_v26, 0.0  ;;  %v81_v29 = vsel %vm50_vm0, %v1304_v27, 0.0 }
  0x1f   :  { %253 = vadd.xlane.f32.xlu1 %v252_v30  ;;  %189 = vadd.xlane.f32.xlu0 %v188_v31  ;;  %v1313_v30 = vld [vmem:[%s1601_s0 + $0xb8] sm:$0xff]  ;;  %v1318_v31 = vld [vmem:[%s1601_s0 + $0xb0] sm:$0xff] }
  0x23   :  { %112 = vadd.xlane.f32.xlu1 %v111_v34  ;;  %64 = vadd.xlane.f32.xlu0 %v63_v35  ;;  %v132_v34 = vsel %vm50_vm0, %v1313_v30, 0.0  ;;  %v84_v35 = vsel %vm50_vm0, %v1318_v31, 0.0 }
  0x27   :  { %115 = vadd.xlane.f32.xlu1 %v114_v38  ;;  %67 = vadd.xlane.f32.xlu0 %v66_v39  ;;  %v237_v38 = vmul.f32 %v1299_v26, %v1299_v26  ;;  %v173_v39 = vmul.f32 %v1304_v27, %v1304_v27 }
  0x29   :  { %v273_v40 = vsel %vm50_vm0, %v237_v38, 0.0  ;;  %v209_v41 = vsel %vm50_vm0, %v173_v39, 0.0 }
  0x2b   :  { %256 = vadd.xlane.f32.xlu1 %v255_v42  ;;  %192 = vadd.xlane.f32.xlu0 %v191_v43  ;;  %v238_v42 = vmul.f32 %v1313_v30, %v1313_v30  ;;  %v174_v43 = vmul.f32 %v1318_v31, %v1318_v31 }
  0x2d   :  { %v276_v44 = vsel %vm50_vm0, %v238_v42, 0.0  ;;  %v212_v45 = vsel %vm50_vm0, %v174_v43, 0.0 }
  0x2f   :  { %259 = vadd.xlane.f32.xlu1 %v258_v46  ;;  %195 = vadd.xlane.f32.xlu0 %v194_v47  ;;  %v1339_v46 = vld [vmem:[%s1601_s0 + $0xc8] sm:$0xff]  ;;  %v1344_v47 = vld [vmem:[%s1601_s0 + $0xc0] sm:$0xff] }
  0x30   :  { %v135_v50 = vsel %vm50_vm0, %v1339_v46, 0.0  ;;  %v87_v51 = vsel %vm50_vm0, %v1344_v47, 0.0  ;;  %v239_v58 = vmul.f32 %v1339_v46, %v1339_v46  ;;  %v175_v59 = vmul.f32 %v1344_v47, %v1344_v47 }
  0x33   :  { %118 = vadd.xlane.f32.xlu1 %v117_v52  ;;  %70 = vadd.xlane.f32.xlu0 %v69_v53  ;;  %v1353_v52 = vld [vmem:[%s1601_s0 + $0xd8] sm:$0xff]  ;;  %v1358_v53 = vld [vmem:[%s1601_s0 + $0xd0] sm:$0xff] }
  0x34   :  { %v240_v62 = vmul.f32 %v1353_v52, %v1353_v52  ;;  %v176_v63 = vmul.f32 %v1358_v53, %v1358_v53 }
  0x37   :  { %121 = vadd.xlane.f32.xlu1 %v120_v56  ;;  %73 = vadd.xlane.f32.xlu0 %v72_v57  ;;  %v138_v56 = vsel %vm50_vm0, %v1353_v52, 0.0  ;;  %v90_v57 = vsel %vm50_vm0, %v1358_v53, 0.0 }
  0x3b   :  { %262 = vadd.xlane.f32.xlu1 %v261_v60  ;;  %198 = vadd.xlane.f32.xlu0 %v197_v61  ;;  %v279_v60 = vsel %vm50_vm0, %v239_v58, 0.0  ;;  %v215_v61 = vsel %vm50_vm0, %v175_v59, 0.0 }
  0x3f   :  { %265 = vadd.xlane.f32.xlu1 %v264_v3  ;;  %201 = vadd.xlane.f32.xlu0 %v200_v4  ;;  %v282_v3 = vsel %vm50_vm0, %v240_v62, 0.0  ;;  %v218_v4 = vsel %vm50_vm0, %v176_v63, 0.0 }
  0x43   :  { %124 = vadd.xlane.f32.xlu1 %v123_v8  ;;  %76 = vadd.xlane.f32.xlu0 %v75_v9  ;;  %v1379_v8 = vld [vmem:[%s1601_s0 + $0xe8] sm:$0xff]  ;;  %v1384_v9 = vld [vmem:[%s1601_s0 + $0xe0] sm:$0xff] }
  0x44   :  { %v241_v22 = vmul.f32 %v1379_v8, %v1379_v8  ;;  %v177_v23 = vmul.f32 %v1384_v9, %v1384_v9 }
  0x47   :  { %127 = vadd.xlane.f32.xlu1 %v126_v12  ;;  %79 = vadd.xlane.f32.xlu0 %v78_v13  ;;  %v141_v12 = vsel %vm50_vm0, %v1379_v8, 0.0  ;;  %v93_v13 = vsel %vm50_vm0, %v1384_v9, 0.0 }
  0x4b   :  { %268 = vadd.xlane.f32.xlu1 %v267_v18  ;;  %204 = vadd.xlane.f32.xlu0 %v203_v19  ;;  %v144_v18 = vsel %vm50_vm0, %v1393_v14, 0.0  ;;  %v96_v19 = vsel %vm50_vm0, %v1398_v15, 0.0 }
  0x4f   :  { %271 = vadd.xlane.f32.xlu1 %v270_v24  ;;  %207 = vadd.xlane.f32.xlu0 %v206_v25  ;;  %v285_v24 = vsel %vm50_vm0, %v241_v22, 0.0  ;;  %v221_v25 = vsel %vm50_vm0, %v177_v23, 0.0 }
  0x53   :  { %130 = vadd.xlane.f32.xlu1 %v129_v28  ;;  %82 = vadd.xlane.f32.xlu0 %v81_v29  ;;  %v242_v28 = vmul.f32 %v1393_v14, %v1393_v14  ;;  %v178_v29 = vmul.f32 %v1398_v15, %v1398_v15 }
  0x57   :  { %133 = vadd.xlane.f32.xlu1 %v132_v34  ;;  %85 = vadd.xlane.f32.xlu0 %v84_v35  ;;  %v288_v34 = vsel %vm50_vm0, %v242_v28, 0.0  ;;  %v224_v35 = vsel %vm50_vm0, %v178_v29, 0.0 }
  0x5b   :  { %274 = vadd.xlane.f32.xlu1 %v273_v40  ;;  %210 = vadd.xlane.f32.xlu0 %v209_v41 }
  0x5f   :  { %277 = vadd.xlane.f32.xlu1 %v276_v44  ;;  %213 = vadd.xlane.f32.xlu0 %v212_v45 }
  0x63   :  { %136 = vadd.xlane.f32.xlu1 %v135_v50  ;;  %88 = vadd.xlane.f32.xlu0 %v87_v51 }
  0x67   :  { %139 = vadd.xlane.f32.xlu1 %v138_v56  ;;  %91 = vadd.xlane.f32.xlu0 %v90_v57 }
  0x6b   :  { %280 = vadd.xlane.f32.xlu1 %v279_v60  ;;  %216 = vadd.xlane.f32.xlu0 %v215_v61 }
  0x6f   :  { %283 = vadd.xlane.f32.xlu1 %v282_v3  ;;  %219 = vadd.xlane.f32.xlu0 %v218_v4 }
  0x73   :  { %142 = vadd.xlane.f32.xlu1 %v141_v12  ;;  %94 = vadd.xlane.f32.xlu0 %v93_v13 }
  0x77   :  { %145 = vadd.xlane.f32.xlu1 %v144_v18  ;;  %97 = vadd.xlane.f32.xlu0 %v96_v19 }
  0x7b   :  { %286 = vadd.xlane.f32.xlu1 %v285_v24  ;;  %222 = vadd.xlane.f32.xlu0 %v221_v25 }
  0x7f   :  { %289 = vadd.xlane.f32.xlu1 %v288_v34  ;;  %225 = vadd.xlane.f32.xlu0 %v224_v35 }
  0x8c   :  { %v56_v38 = vpop.xlane.xlu1 %55  ;;  %v53_v39 = vpop.xlane.xlu0 %52 }
  0x90   :  { %v104_v40 = vpop.xlane.xlu1 %103  ;;  %v101_v41 = vpop.xlane.xlu0 %100 }
  0x91   :  { %v147_v42 = vadd.f32 %v101_v41, %v53_v39  ;;  %v148_v43 = vadd.f32 %v104_v40, %v56_v38 }
  0x93   :  { %v307_v44 = vmul.f32 0.0625, %v147_v42  ;;  %v308_v56 = vmul.f32 0.0625, %v148_v43 }
  0x94   :  { %v245_v45 = vpop.xlane.xlu1 %244  ;;  %v181_v50 = vpop.xlane.xlu0 %180 }
  0x95   :  { %v291_v51 = vadd.f32 %v245_v45, %v181_v50  ;;  %v339_v57 = vmul.f32 %v307_v44, %v307_v44  ;;  %v340_v3 = vmul.f32 %v308_v56, %v308_v56  ;;  %v435_v50 = vsub.f32 %v1112_v5, %v307_v44 }
  0x97   :  { %v323_v58 = vmul.f32 0.0625, %v291_v51  ;;  %v403_v51 = vsub.f32 %v1098_v1, %v307_v44 }
  0x98   :  { %v248_v59 = vpop.xlane.xlu1 %247  ;;  %v184_v60 = vpop.xlane.xlu0 %183 }
  0x99   :  { %v355_v61 = vsub.f32 %v323_v58, %v339_v57  ;;  %v292_v62 = vadd.f32 %v248_v59, %v184_v60 }
  0x9b   :  { %v371_v63 = vadd.f32 1e-05, %v355_v61  ;;  %v324_v4 = vmul.f32 0.0625, %v292_v62 }
  0x9c   :  { %v107_v12 = vpop.xlane.xlu1 %106  ;;  %v59_v13 = vpop.xlane.xlu0 %58 }
  0x9d   :  { %1033 = vrsqrt.f32 %v371_v63  ;;  %v356_v18 = vsub.f32 %v324_v4, %v340_v3  ;;  %v149_v22 = vadd.f32 %v107_v12, %v59_v13  ;;  %v404_v4 = vsub.f32 %v1093_v0, %v308_v56 }
  0x9e   :  { %v436_v12 = vsub.f32 %v1103_v2, %v308_v56 }
  0x9f   :  { %v372_v19 = vadd.f32 1e-05, %v356_v18  ;;  %v309_v28 = vmul.f32 0.0625, %v149_v22 }
  0xa0   :  { %v110_v23 = vpop.xlane.xlu1 %109  ;;  %v62_v24 = vpop.xlane.xlu0 %61 }
  0xa1   :  { %1035 = vrsqrt.f32 %v372_v19  ;;  %v150_v25 = vadd.f32 %v110_v23, %v62_v24  ;;  %v341_v39 = vmul.f32 %v309_v28, %v309_v28 }
  0xa3   :  { %v1416_v38 = vmul.f32 0.0625, %v150_v25 }
  0xa4   :  { %v251_v29 = vpop.xlane.xlu1 %250  ;;  %v187_v34 = vpop.xlane.xlu0 %186 }
  0xa5   :  { %v293_v35 = vadd.f32 %v251_v29, %v187_v34  ;;  %v342_v58 = vmul.f32 %v1416_v38, %v1416_v38 }
  0xa7   :  { %v325_v40 = vmul.f32 0.0625, %v293_v35 }
  0xa8   :  { %v254_v41 = vpop.xlane.xlu1 %253  ;;  %v190_v42 = vpop.xlane.xlu0 %189 }
  0xa9   :  { %v357_v43 = vsub.f32 %v325_v40, %v341_v39  ;;  %v294_v45 = vadd.f32 %v254_v41, %v190_v42  ;;  %v405_v41 = vsub.f32 %v1138_v17, %v309_v28  ;;  %v437_v42 = vsub.f32 %v1133_v16, %v309_v28 }
  0xaa   :  { %v1034_v57 = vpop.eup %1033  ;;  %v438_v17 = vsub.f32 %v1147_v20, %v1416_v38 }
  0xab   :  { %v373_v59 = vadd.f32 1e-05, %v357_v43  ;;  %v326_v60 = vmul.f32 0.0625, %v294_v45  ;;  %v451_v61 = vmul.f32 %v1034_v57, %v435_v50  ;;  %v419_v62 = vmul.f32 %v1034_v57, %v403_v51 }
  0xac   :  { %v113_v63 = vpop.xlane.xlu1 %112  ;;  %v65_v3 = vpop.xlane.xlu0 %64 }
  0xad   :  { %1037 = vrsqrt.f32 %v373_v59  ;;  %v358_v13 = vsub.f32 %v326_v60, %v342_v58  ;;  %983 = vmatprep.mubr.msk.f32.mxu0 %vm50_vm0, %v451_v61  ;;  %1009 = vmatprep.mubr.msk.f32.mxu1 %vm50_vm0, %v419_v62  ;;  %v151_v44 = vadd.f32 %v113_v63, %v65_v3  ;;  %v406_v63 = vsub.f32 %v1152_v21, %v1416_v38 }
  0xae   :  { %v1036_v1 = vpop.eup %1035 }
  0xaf   :  { %v374_v5 = vadd.f32 1e-05, %v358_v13  ;;  %v452_v18 = vmul.f32 %v1036_v1, %v436_v12  ;;  %v420_v19 = vmul.f32 %v1036_v1, %v404_v4  ;;  %v311_v2 = vmul.f32 0.0625, %v151_v44 }
  0xb0   :  { %v116_v22 = vpop.xlane.xlu1 %115  ;;  %v68_v23 = vpop.xlane.xlu0 %67 }
  0xb1   :  { %1039 = vrsqrt.f32 %v374_v5  ;;  %984 = vmatmul.mubr.msk.f32.vlgmr.msra.gmra.mxu0 %vm50_vm0, %v452_v18  ;;  %1010 = vmatmul.mubr.msk.f32.vlgmr.msra.gmra.mxu1 %vm50_vm0, %v420_v19  ;;  %v152_v0 = vadd.f32 %v116_v22, %v68_v23  ;;  %v343_v34 = vmul.f32 %v311_v2, %v311_v2 }
  0xb3   :  { %v1428_v29 = vmul.f32 0.0625, %v152_v0 }
  0xb4   :  { %v257_v56 = vpop.xlane.xlu1 %256  ;;  %v193_v24 = vpop.xlane.xlu0 %192 }
  0xb5   :  { %v295_v25 = vadd.f32 %v257_v56, %v193_v24  ;;  %v344_v51 = vmul.f32 %v1428_v29, %v1428_v29  ;;  %v407_v24 = vsub.f32 %v1178_v33, %v311_v2  ;;  %v440_v33 = vsub.f32 %v1187_v36, %v1428_v29 }
  0xb7   :  { %v327_v35 = vmul.f32 0.0625, %v295_v25  ;;  %v439_v25 = vsub.f32 %v1173_v32, %v311_v2 }
  0xb8   :  { %v260_v39 = vpop.xlane.xlu1 %259  ;;  %v196_v40 = vpop.xlane.xlu0 %195 }
  0xb9   :  { %v359_v43 = vsub.f32 %v327_v35, %v343_v34  ;;  %v296_v45 = vadd.f32 %v260_v39, %v196_v40 }
  0xba   :  { %v1038_v50 = vpop.eup %1037 }
  0xbb   :  { %v375_v57 = vadd.f32 1e-05, %v359_v43  ;;  %v328_v58 = vmul.f32 0.0625, %v296_v45  ;;  %v453_v59 = vmul.f32 %v1038_v50, %v437_v42  ;;  %v421_v60 = vmul.f32 %v1038_v50, %v405_v41 }
  0xbc   :  { %v119_v61 = vpop.xlane.xlu1 %118  ;;  %v71_v62 = vpop.xlane.xlu0 %70 }
  0xbd   :  { %1041 = vrsqrt.f32 %v375_v57  ;;  %v360_v16 = vsub.f32 %v328_v58, %v344_v51  ;;  %986 = vmatprep.mubr.msk.f32.mxu0 %vm50_vm0, %v453_v59  ;;  %1012 = vmatprep.mubr.msk.f32.mxu1 %vm50_vm0, %v421_v60  ;;  %v153_v4 = vadd.f32 %v119_v61, %v71_v62  ;;  %v408_v57 = vsub.f32 %v1192_v37, %v1428_v29 }
  0xbe   :  { %v1040_v28 = vpop.eup %1039 }
  0xbf   :  { %v376_v3 = vadd.f32 1e-05, %v360_v16  ;;  %v454_v12 = vmul.f32 %v1040_v28, %v438_v17  ;;  %v422_v13 = vmul.f32 %v1040_v28, %v406_v63  ;;  %v313_v20 = vmul.f32 0.0625, %v153_v4 }
  0xc0   :  { %v122_v1 = vpop.xlane.xlu1 %121  ;;  %v74_v5 = vpop.xlane.xlu0 %73 }
  0xc1   :  { %1043 = vrsqrt.f32 %v376_v3  ;;  %987 = vmatmul.mubr.msk.f32.gmra.mxu0 %vm50_vm0, %v454_v12  ;;  %1013 = vmatmul.mubr.msk.f32.gmra.mxu1 %vm50_vm0, %v422_v13  ;;  %v154_v21 = vadd.f32 %v122_v1, %v74_v5  ;;  %v345_v22 = vmul.f32 %v313_v20, %v313_v20  ;;  %v409_v1 = vsub.f32 %v1218_v49, %v313_v20 }
  0xc2   :  { %v441_v5 = vsub.f32 %v1213_v48, %v313_v20 }
  0xc3   :  { %v1442_v19 = vmul.f32 0.0625, %v154_v21 }
  0xc4   :  { %v263_v38 = vpop.xlane.xlu1 %262  ;;  %v199_v44 = vpop.xlane.xlu0 %198 }
  0xc5   :  { %v297_v18 = vadd.f32 %v263_v38, %v199_v44  ;;  %v346_v40 = vmul.f32 %v1442_v19, %v1442_v19  ;;  %v442_v49 = vsub.f32 %v1233_v54, %v1442_v19 }
  0xc7   :  { %v329_v23 = vmul.f32 0.0625, %v297_v18 }
  0xc8   :  { %v266_v0 = vpop.xlane.xlu1 %265  ;;  %v202_v56 = vpop.xlane.xlu0 %201 }
  0xc9   :  { %v361_v34 = vsub.f32 %v329_v23, %v345_v22  ;;  %v298_v35 = vadd.f32 %v266_v0, %v202_v56 }
  0xca   :  { %v1042_v39 = vpop.eup %1041 }
  0xcb   :  { %v377_v41 = vadd.f32 1e-05, %v361_v34  ;;  %v330_v42 = vmul.f32 0.0625, %v298_v35  ;;  %v455_v43 = vmul.f32 %v1042_v39, %v439_v25  ;;  %v423_v45 = vmul.f32 %v1042_v39, %v407_v24 }
  0xcc   :  { %v125_v50 = vpop.xlane.xlu1 %124  ;;  %v77_v51 = vpop.xlane.xlu0 %76  ;;  %v410_v34 = vsub.f32 %v1238_v55, %v1442_v19 }
  0xcd   :  { %1045 = vrsqrt.f32 %v377_v41  ;;  %v362_v32 = vsub.f32 %v330_v42, %v346_v40  ;;  %989 = vmatprep.mubr.msk.f32.mxu0 %vm50_vm0, %v455_v43  ;;  %1015 = vmatprep.mubr.msk.f32.mxu1 %vm50_vm0, %v423_v45  ;;  %v155_v59 = vadd.f32 %v125_v50, %v77_v51 }
  0xce   :  { %v1044_v2 = vpop.eup %1043 }
  0xcf   :  { %v378_v58 = vadd.f32 1e-05, %v362_v32  ;;  %v456_v60 = vmul.f32 %v1044_v2, %v440_v33  ;;  %v424_v61 = vmul.f32 %v1044_v2, %v408_v57  ;;  %v315_v36 = vmul.f32 0.0625, %v155_v59 }
  0xd0   :  { %v128_v62 = vpop.xlane.xlu1 %127  ;;  %v80_v63 = vpop.xlane.xlu0 %79 }
  0xd1   :  { %1047 = vrsqrt.f32 %v378_v58  ;;  %990 = vmatmul.mubr.msk.f32.gmra.mxu0 %vm50_vm0, %v456_v60  ;;  %1016 = vmatmul.mubr.msk.f32.gmra.mxu1 %vm50_vm0, %v424_v61  ;;  %v156_v37 = vadd.f32 %v128_v62, %v80_v63  ;;  %v347_v3 = vmul.f32 %v315_v36, %v315_v36  ;;  %v411_v58 = vsub.f32 %v1264_v7, %v315_v36 }
  0xd2   :  { %v443_v59 = vsub.f32 %v1259_v6, %v315_v36 }
  0xd3   :  { %v1456_v28 = vmul.f32 0.0625, %v156_v37 }
  0xd4   :  { %v269_v29 = vpop.xlane.xlu1 %268  ;;  %v205_v17 = vpop.xlane.xlu0 %204 }
  0xd5   :  { %v299_v16 = vadd.f32 %v269_v29, %v205_v17  ;;  %v348_v18 = vmul.f32 %v1456_v28, %v1456_v28  ;;  %v444_v7 = vsub.f32 %v1273_v10, %v1456_v28 }
  0xd7   :  { %v331_v4 = vmul.f32 0.0625, %v299_v16 }
  0xd8   :  { %v272_v12 = vpop.xlane.xlu1 %271  ;;  %v208_v13 = vpop.xlane.xlu0 %207 }
  0xd9   :  { %v363_v21 = vsub.f32 %v331_v4, %v347_v3  ;;  %v300_v38 = vadd.f32 %v272_v12, %v208_v13  ;;  %v412_v12 = vsub.f32 %v1278_v11, %v1456_v28 }
  0xda   :  { %v1046_v44 = vpop.eup %1045 }
  0xdb   :  { %v379_v22 = vadd.f32 1e-05, %v363_v21  ;;  %v332_v23 = vmul.f32 0.0625, %v300_v38  ;;  %v457_v0 = vmul.f32 %v1046_v44, %v441_v5  ;;  %v425_v56 = vmul.f32 %v1046_v44, %v409_v1 }
  0xdc   :  { %v131_v24 = vpop.xlane.xlu1 %130  ;;  %v83_v25 = vpop.xlane.xlu0 %82 }
  0xdd   :  { %1049 = vrsqrt.f32 %v379_v22  ;;  %v364_v48 = vsub.f32 %v332_v23, %v348_v18  ;;  %992 = vmatprep.mubr.msk.f32.mxu0 %vm50_vm0, %v457_v0  ;;  %1018 = vmatprep.mubr.msk.f32.mxu1 %vm50_vm0, %v425_v56  ;;  %v157_v39 = vadd.f32 %v131_v24, %v83_v25 }
  0xde   :  { %v1048_v20 = vpop.eup %1047 }
  0xdf   :  { %v380_v35 = vadd.f32 1e-05, %v364_v48  ;;  %v458_v40 = vmul.f32 %v1048_v20, %v442_v49  ;;  %v426_v41 = vmul.f32 %v1048_v20, %v410_v34  ;;  %v317_v54 = vmul.f32 0.0625, %v157_v39 }
  0xe0   :  { %v134_v42 = vpop.xlane.xlu1 %133  ;;  %v86_v43 = vpop.xlane.xlu0 %85 }
  0xe1   :  { %1051 = vrsqrt.f32 %v380_v35  ;;  %993 = vmatmul.mubr.msk.f32.gmra.mxu0 %vm50_vm0, %v458_v40  ;;  %1019 = vmatmul.mubr.msk.f32.gmra.mxu1 %vm50_vm0, %v426_v41  ;;  %v158_v55 = vadd.f32 %v134_v42, %v86_v43  ;;  %v349_v57 = vmul.f32 %v317_v54, %v317_v54  ;;  %v413_v34 = vsub.f32 %v1304_v27, %v317_v54 }
  0xe2   :  { %v445_v49 = vsub.f32 %v1299_v26, %v317_v54 }
  0xe3   :  { %v1470_v51 = vmul.f32 0.0625, %v158_v55 }
  0xe4   :  { %v275_v19 = vpop.xlane.xlu1 %274  ;;  %v211_v45 = vpop.xlane.xlu0 %210 }
  0xe5   :  { %v301_v50 = vadd.f32 %v275_v19, %v211_v45  ;;  %v350_v63 = vmul.f32 %v1470_v51, %v1470_v51  ;;  %v414_v45 = vsub.f32 %v1318_v31, %v1470_v51  ;;  %v446_v27 = vsub.f32 %v1313_v30, %v1470_v51 }
  0xe7   :  { %v333_v33 = vmul.f32 0.0625, %v301_v50 }
  0xe8   :  { %v278_v32 = vpop.xlane.xlu1 %277  ;;  %v214_v2 = vpop.xlane.xlu0 %213 }
  0xe9   :  { %v365_v60 = vsub.f32 %v333_v33, %v349_v57  ;;  %v302_v61 = vadd.f32 %v278_v32, %v214_v2 }
  0xea   :  { %v1050_v62 = vpop.eup %1049 }
  0xeb   :  { %v381_v37 = vadd.f32 1e-05, %v365_v60  ;;  %v334_v29 = vmul.f32 0.0625, %v302_v61  ;;  %v459_v17 = vmul.f32 %v1050_v62, %v443_v59  ;;  %v427_v16 = vmul.f32 %v1050_v62, %v411_v58 }
  0xec   :  { %v137_v3 = vpop.xlane.xlu1 %136  ;;  %v89_v4 = vpop.xlane.xlu0 %88 }
  0xed   :  { %1053 = vrsqrt.f32 %v381_v37  ;;  %v366_v6 = vsub.f32 %v334_v29, %v350_v63  ;;  %995 = vmatprep.mubr.msk.f32.mxu0 %vm50_vm0, %v459_v17  ;;  %1021 = vmatprep.mubr.msk.f32.mxu1 %vm50_vm0, %v427_v16  ;;  %v159_v1 = vadd.f32 %v137_v3, %v89_v4 }
  0xee   :  { %v1052_v36 = vpop.eup %1051 }
  0xef   :  { %v382_v13 = vadd.f32 1e-05, %v366_v6  ;;  %v460_v5 = vmul.f32 %v1052_v36, %v444_v7  ;;  %v428_v21 = vmul.f32 %v1052_v36, %v412_v12  ;;  %v319_v10 = vmul.f32 0.0625, %v159_v1 }
  0xf0   :  { %v140_v38 = vpop.xlane.xlu1 %139  ;;  %v92_v44 = vpop.xlane.xlu0 %91 }
  0xf1   :  { %1055 = vrsqrt.f32 %v382_v13  ;;  %996 = vmatmul.mubr.msk.f32.gmra.mxu0 %vm50_vm0, %v460_v5  ;;  %1022 = vmatmul.mubr.msk.f32.gmra.mxu1 %vm50_vm0, %v428_v21  ;;  %v160_v11 = vadd.f32 %v140_v38, %v92_v44  ;;  %v351_v0 = vmul.f32 %v319_v10, %v319_v10  ;;  %v415_v17 = vsub.f32 %v1344_v47, %v319_v10 }
  0xf2   :  { %v447_v16 = vsub.f32 %v1339_v46, %v319_v10 }
  0xf3   :  { %v1484_v23 = vmul.f32 0.0625, %v160_v11 }
  0xf4   :  { %v281_v28 = vpop.xlane.xlu1 %280  ;;  %v217_v18 = vpop.xlane.xlu0 %216 }
  0xf5   :  { %v303_v22 = vadd.f32 %v281_v28, %v217_v18  ;;  %v352_v39 = vmul.f32 %v1484_v23, %v1484_v23  ;;  %v416_v5 = vsub.f32 %v1358_v53, %v1484_v23  ;;  %v448_v21 = vsub.f32 %v1353_v52, %v1484_v23 }
  0xf7   :  { %v335_v56 = vmul.f32 0.0625, %v303_v22 }
  0xf8   :  { %v284_v24 = vpop.xlane.xlu1 %283  ;;  %v220_v25 = vpop.xlane.xlu0 %219 }
  0xf9   :  { %v367_v48 = vsub.f32 %v335_v56, %v351_v0  ;;  %v304_v20 = vadd.f32 %v284_v24, %v220_v25  ;;  %v1519_v25 = vld [vmem:[%s1604_s3] ss:$0 sm:$0xff] }
  0xfa   :  { %v1054_v35 = vpop.eup %1053 }
  0xfb   :  { %v383_v40 = vadd.f32 1e-05, %v367_v48  ;;  %v336_v41 = vmul.f32 0.0625, %v304_v20  ;;  %v461_v42 = vmul.f32 %v1054_v35, %v445_v49  ;;  %v429_v43 = vmul.f32 %v1054_v35, %v413_v34 }
  0xfc   :  { %v143_v55 = vpop.xlane.xlu1 %142  ;;  %v95_v19 = vpop.xlane.xlu0 %94 }
  0xfd   :  { %1057 = vrsqrt.f32 %v383_v40  ;;  %v368_v26 = vsub.f32 %v336_v41, %v352_v39  ;;  %998 = vmatprep.mubr.msk.f32.mxu0 %vm50_vm0, %v461_v42  ;;  %1024 = vmatprep.mubr.msk.f32.mxu1 %vm50_vm0, %v429_v43  ;;  %v161_v57 = vadd.f32 %v143_v55, %v95_v19 }
  0xfe   :  { %v1056_v54 = vpop.eup %1055 }
  0xff   :  { %v384_v50 = vadd.f32 1e-05, %v368_v26  ;;  %v462_v33 = vmul.f32 %v1056_v54, %v446_v27  ;;  %v430_v32 = vmul.f32 %v1056_v54, %v414_v45  ;;  %v321_v30 = vmul.f32 0.0625, %v161_v57 }
 0x100   :  { %v146_v2 = vpop.xlane.xlu1 %145  ;;  %v98_v58 = vpop.xlane.xlu0 %97 }
 0x101   :  { %1059 = vrsqrt.f32 %v384_v50  ;;  %999 = vmatmul.mubr.msk.f32.gmra.mxu0 %vm50_vm0, %v462_v33  ;;  %1025 = vmatmul.mubr.msk.f32.gmra.mxu1 %vm50_vm0, %v430_v32  ;;  %v162_v31 = vadd.f32 %v146_v2, %v98_v58  ;;  %v353_v62 = vmul.f32 %v321_v30, %v321_v30  ;;  %v417_v53 = vsub.f32 %v1384_v9, %v321_v30 }
 0x102   :  { %v449_v10 = vsub.f32 %v1379_v8, %v321_v30 }
 0x103   :  { %v322_v61 = vmul.f32 0.0625, %v162_v31 }
 0x104   :  { %v287_v51 = vpop.xlane.xlu1 %286  ;;  %v223_v59 = vpop.xlane.xlu0 %222 }
 0x105   :  { %v305_v60 = vadd.f32 %v287_v51, %v223_v59  ;;  %v354_v7 = vmul.f32 %v322_v61, %v322_v61  ;;  %v418_v22 = vsub.f32 %v1398_v15, %v322_v61  ;;  %v450_v23 = vsub.f32 %v1393_v14, %v322_v61 }
 0x107   :  { %v337_v63 = vmul.f32 0.0625, %v305_v60 }
 0x108   :  { %v290_v37 = vpop.xlane.xlu1 %289  ;;  %v226_v29 = vpop.xlane.xlu0 %225 }
 0x109   :  { %v369_v3 = vsub.f32 %v337_v63, %v353_v62  ;;  %v306_v4 = vadd.f32 %v290_v37, %v226_v29 }
 0x10a   :  { %v1058_v12 = vpop.eup %1057 }
 0x10b   :  { %v385_v6 = vadd.f32 1e-05, %v369_v3  ;;  %v338_v36 = vmul.f32 0.0625, %v306_v4  ;;  %v463_v13 = vmul.f32 %v1058_v12, %v447_v16  ;;  %v431_v1 = vmul.f32 %v1058_v12, %v415_v17 }
 0x10d   :  { %1061 = vrsqrt.f32 %v385_v6  ;;  %v370_v38 = vsub.f32 %v338_v36, %v354_v7  ;;  %1001 = vmatprep.mubr.msk.f32.mxu0 %vm50_vm0, %v463_v13  ;;  %1027 = vmatprep.mubr.msk.f32.mxu1 %vm50_vm0, %v431_v1 }
 0x10e   :  { %v1060_v46 = vpop.eup %1059 }
 0x10f   :  { %v386_v47 = vadd.f32 1e-05, %v370_v38  ;;  %v464_v44 = vmul.f32 %v1060_v46, %v448_v21  ;;  %v432_v11 = vmul.f32 %v1060_v46, %v416_v5 }
 0x111   :  { %1063 = vrsqrt.f32 %v386_v47  ;;  %1002 = vmatmul.mubr.msk.f32.gmra.mxu0 %vm50_vm0, %v464_v44  ;;  %1028 = vmatmul.mubr.msk.f32.gmra.mxu1 %vm50_vm0, %v432_v11 }
 0x11a   :  { %v1062_v52 = vpop.eup %1061 }
 0x11b   :  { %v465_v28 = vmul.f32 %v1062_v52, %v449_v10  ;;  %v433_v18 = vmul.f32 %v1062_v52, %v417_v53 }
 0x11d   :  { %1004 = vmatprep.mubr.msk.f32.mxu0 %vm50_vm0, %v465_v28  ;;  %1030 = vmatprep.mubr.msk.f32.mxu1 %vm50_vm0, %v433_v18 }
 0x11e   :  { %v1064_v0 = vpop.eup %1063 }
 0x11f   :  { %v466_v56 = vmul.f32 %v1064_v0, %v450_v23  ;;  %v434_v24 = vmul.f32 %v1064_v0, %v418_v22 }
 0x121   :  { %1005 = vmatmul.mubr.msk.f32.gmra.mxu0 %vm50_vm0, %v466_v56  ;;  %1031 = vmatmul.mubr.msk.f32.gmra.mxu1 %vm50_vm0, %v434_v24 }
 0x171   :  { %v985_v9 = vpop.f32.mrf.mxu0  ;;  %v1011_v8 = vpop.f32.mrf.mxu1 }
 0x172   :  { %v782_v15 = vadd.f32 %v1011_v8, %v985_v9 }
 0x173   :  { %v583_v14 = vpop.f32.mrf.mxu0  ;;  %v776_v34 = vpop.f32.mrf.mxu1 }
 0x174   :  { %v863_v49 = vadd.f32 %v1519_v25, %v782_v15  ;;  %v777_v48 = vadd.f32 %v776_v34, %v583_v14 }
 0x176   :  { %879 = vst.msk [vmem:[%s1605_s4 + $0x8] sm:$0xff] %vm50_vm0, %v863_v49  ;;  %v862_v20 = vadd.f32 %v1519_v25, %v777_v48 }
 0x178   :  { %878 = vst.msk [vmem:[%s1605_s4] sm:$0xff] %vm50_vm0, %v862_v20 }
 0x181   :  { %v988_v35 = vpop.f32.mrf.mxu0  ;;  %v1014_v39 = vpop.f32.mrf.mxu1 }
 0x182   :  { %v792_v40 = vadd.f32 %v1014_v39, %v988_v35 }
 0x183   :  { %v593_v41 = vpop.f32.mrf.mxu0  ;;  %v786_v42 = vpop.f32.mrf.mxu1 }
 0x184   :  { %v865_v43 = vadd.f32 %v1519_v25, %v792_v40  ;;  %v787_v55 = vadd.f32 %v786_v42, %v593_v41 }
 0x186   :  { %881 = vst.msk [vmem:[%s1605_s4 + $0x18] sm:$0xff] %vm50_vm0, %v865_v43  ;;  %v864_v19 = vadd.f32 %v1519_v25, %v787_v55 }
 0x188   :  { %880 = vst.msk [vmem:[%s1605_s4 + $0x10] sm:$0xff] %vm50_vm0, %v864_v19 }
 0x191   :  { %v991_v45 = vpop.f32.mrf.mxu0  ;;  %v1017_v27 = vpop.f32.mrf.mxu1 }
 0x192   :  { %v802_v26 = vadd.f32 %v1017_v27, %v991_v45 }
 0x193   :  { %v603_v54 = vpop.f32.mrf.mxu0  ;;  %v796_v50 = vpop.f32.mrf.mxu1 }
 0x194   :  { %v867_v57 = vadd.f32 %v1519_v25, %v802_v26  ;;  %v797_v33 = vadd.f32 %v796_v50, %v603_v54 }
 0x196   :  { %883 = vst.msk [vmem:[%s1605_s4 + $0x28] sm:$0xff] %vm50_vm0, %v867_v57  ;;  %v866_v32 = vadd.f32 %v1519_v25, %v797_v33 }
 0x198   :  { %882 = vst.msk [vmem:[%s1605_s4 + $0x20] sm:$0xff] %vm50_vm0, %v866_v32 }
 0x1a1   :  { %v994_v2 = vpop.f32.mrf.mxu0  ;;  %v1020_v58 = vpop.f32.mrf.mxu1 }
 0x1a2   :  { %v812_v31 = vadd.f32 %v1020_v58, %v994_v2 }
 0x1a3   :  { %v613_v30 = vpop.f32.mrf.mxu0  ;;  %v806_v51 = vpop.f32.mrf.mxu1 }
 0x1a4   :  { %v869_v59 = vadd.f32 %v1519_v25, %v812_v31  ;;  %v807_v60 = vadd.f32 %v806_v51, %v613_v30 }
 0x1a6   :  { %885 = vst.msk [vmem:[%s1605_s4 + $0x38] sm:$0xff] %vm50_vm0, %v869_v59  ;;  %v868_v61 = vadd.f32 %v1519_v25, %v807_v60 }
 0x1a8   :  { %884 = vst.msk [vmem:[%s1605_s4 + $0x30] sm:$0xff] %vm50_vm0, %v868_v61 }
 0x1b1   :  { %v997_v62 = vpop.f32.mrf.mxu0  ;;  %v1023_v63 = vpop.f32.mrf.mxu1 }
 0x1b2   :  { %v822_v37 = vadd.f32 %v1023_v63, %v997_v62 }
 0x1b3   :  { %v623_v29 = vpop.f32.mrf.mxu0  ;;  %v816_v17 = vpop.f32.mrf.mxu1 }
 0x1b4   :  { %v871_v16 = vadd.f32 %v1519_v25, %v822_v37  ;;  %v817_v3 = vadd.f32 %v816_v17, %v623_v29 }
 0x1b6   :  { %887 = vst.msk [vmem:[%s1605_s4 + $0x48] sm:$0xff] %vm50_vm0, %v871_v16  ;;  %v870_v4 = vadd.f32 %v1519_v25, %v817_v3 }
 0x1b8   :  { %886 = vst.msk [vmem:[%s1605_s4 + $0x40] sm:$0xff] %vm50_vm0, %v870_v4 }
 0x1c1   :  { %v1000_v12 = vpop.f32.mrf.mxu0  ;;  %v1026_v7 = vpop.f32.mrf.mxu1 }
 0x1c2   :  { %v832_v6 = vadd.f32 %v1026_v7, %v1000_v12 }
 0x1c3   :  { %v633_v36 = vpop.f32.mrf.mxu0  ;;  %v826_v13 = vpop.f32.mrf.mxu1 }
 0x1c4   :  { %v873_v1 = vadd.f32 %v1519_v25, %v832_v6  ;;  %v827_v5 = vadd.f32 %v826_v13, %v633_v36 }
 0x1c6   :  { %889 = vst.msk [vmem:[%s1605_s4 + $0x58] sm:$0xff] %vm50_vm0, %v873_v1  ;;  %v872_v21 = vadd.f32 %v1519_v25, %v827_v5 }
 0x1c8   :  { %888 = vst.msk [vmem:[%s1605_s4 + $0x50] sm:$0xff] %vm50_vm0, %v872_v21 }
 0x1d1   :  { %v1003_v38 = vpop.f32.mrf.mxu0  ;;  %v1029_v46 = vpop.f32.mrf.mxu1 }
 0x1d2   :  { %v842_v47 = vadd.f32 %v1029_v46, %v1003_v38 }
 0x1d3   :  { %v643_v44 = vpop.f32.mrf.mxu0  ;;  %v836_v11 = vpop.f32.mrf.mxu1 }
 0x1d4   :  { %v875_v53 = vadd.f32 %v1519_v25, %v842_v47  ;;  %v837_v10 = vadd.f32 %v836_v11, %v643_v44 }
 0x1d6   :  { %891 = vst.msk [vmem:[%s1605_s4 + $0x68] sm:$0xff] %vm50_vm0, %v875_v53  ;;  %v874_v52 = vadd.f32 %v1519_v25, %v837_v10 }
 0x1d8   :  { %890 = vst.msk [vmem:[%s1605_s4 + $0x60] sm:$0xff] %vm50_vm0, %v874_v52 }
 0x1e1   :  { %v1006_v28 = vpop.f32.mrf.mxu0  ;;  %v1032_v18 = vpop.f32.mrf.mxu1 }
 0x1e2   :  { %v852_v22 = vadd.f32 %v1032_v18, %v1006_v28 }
 0x1e3   :  { %v653_v23 = vpop.f32.mrf.mxu0  ;;  %v846_v0 = vpop.f32.mrf.mxu1 }
 0x1e4   :  { %v877_v56 = vadd.f32 %v1519_v25, %v852_v22  ;;  %v847_v24 = vadd.f32 %v846_v0, %v653_v23 }
 0x1e6   :  { %893 = vst.msk [vmem:[%s1605_s4 + $0x78] sm:$0xff] %vm50_vm0, %v877_v56  ;;  %v876_v9 = vadd.f32 %v1519_v25, %v847_v24 }
 0x1e8   :  { %892 = vst.msk [vmem:[%s1605_s4 + $0x70] sm:$0xff] %vm50_vm0, %v876_v9 }

// kernel: tpu_custom_call.1
= control target key start
LH: loop header
LB: loop body
LE: loop exit
PB: predicated region body
PF: predicated region fallthrough
CT: control target
= control target key end

     0   :  { %vm50_vm0 = vcmask 64512   ;;  %s1601_s0 = inlined_call_operand.vmem [shape: f32[16,2,8,8], index: 0, kind: input, shape index: {}]   ;;  %s1602_s2 = inlined_call_operand.vmem [shape: f32[8,8], index: 2, kind: input, shape index: {}]   ;;  %s1603_s1 = inlined_call_operand.vmem [shape: f32[8,8], index: 1, kind: input, shape index: {}]   ;;  %s1604_s3 = inlined_call_operand.vmem [shape: f32[1,8], index: 3, kind: input, shape index: {}]   ;;  %s1605_s4 = inlined_call_operand.vmem [shape: f32[128,8], index: 4, kind: output, shape index: {}]  }
   0x1   :  { %v1093_v0 = vld [vmem:[%s1601_s0 + $0x10] sm:$0xff]  ;;  %v1098_v1 = vld [vmem:[%s1601_s0] sm:$0xff]  ;;  %v1103_v2 = vld [vmem:[%s1601_s0 + $0x18] sm:$0xff] }
   0x2   :  { %v54_v3 = vsel %vm50_vm0, %v1093_v0, 0.0  ;;  %v51_v4 = vsel %vm50_vm0, %v1098_v1, 0.0  ;;  %v1112_v5 = vld [vmem:[%s1601_s0 + $0x8] sm:$0xff]  ;;  %v102_v6 = vsel %vm50_vm0, %v1103_v2, 0.0  ;;  %v163_v9 = vmul.f32 %v1098_v1, %v1098_v1  ;;  %v1138_v17 = vld [vmem:[%s1601_s0 + $0x20] sm:$0xff]  ;;  %v1147_v20 = vld [vmem:[%s1601_s0 + $0x38] sm:$0xff] }
   0x3   :  { %55 = vadd.xlane.f32.xlu1 %v54_v3  ;;  %52 = vadd.xlane.f32.xlu0 %v51_v4  ;;  %v99_v7 = vsel %vm50_vm0, %v1112_v5, 0.0  ;;  %v227_v8 = vmul.f32 %v1112_v5, %v1112_v5  ;;  %v228_v12 = vmul.f32 %v1103_v2, %v1103_v2  ;;  %v164_v13 = vmul.f32 %v1093_v0, %v1093_v0  ;;  %v1133_v16 = vld [vmem:[%s1601_s0 + $0x28] sm:$0xff]  ;;  %v1152_v21 = vld [vmem:[%s1601_s0 + $0x30] sm:$0xff]  ;;  %v1178_v33 = vld [vmem:[%s1601_s0 + $0x40] sm:$0xff] }
   0x4   :  { %v179_v11 = vsel %vm50_vm0, %v163_v9, 0.0  ;;  %v105_v18 = vsel %vm50_vm0, %v1133_v16, 0.0  ;;  %v57_v19 = vsel %vm50_vm0, %v1138_v17, 0.0  ;;  %v108_v22 = vsel %vm50_vm0, %v1147_v20, 0.0  ;;  %v1173_v32 = vld [vmem:[%s1601_s0 + $0x48] sm:$0xff]  ;;  %v1187_v36 = vld [vmem:[%s1601_s0 + $0x58] sm:$0xff] }
   0x5   :  { %v243_v10 = vsel %vm50_vm0, %v227_v8, 0.0  ;;  %v246_v14 = vsel %vm50_vm0, %v228_v12, 0.0  ;;  %v182_v15 = vsel %vm50_vm0, %v164_v13, 0.0  ;;  %v60_v23 = vsel %vm50_vm0, %v1152_v21, 0.0  ;;  %v1192_v37 = vld [vmem:[%s1601_s0 + $0x50] sm:$0xff]  ;;  %v1213_v48 = vld [vmem:[%s1601_s0 + $0x68] sm:$0xff] }
   0x6   :  { %v229_v24 = vmul.f32 %v1133_v16, %v1133_v16  ;;  %v165_v25 = vmul.f32 %v1138_v17, %v1138_v17  ;;  %v230_v28 = vmul.f32 %v1147_v20, %v1147_v20  ;;  %v166_v29 = vmul.f32 %v1152_v21, %v1152_v21  ;;  %v1218_v49 = vld [vmem:[%s1601_s0 + $0x60] sm:$0xff]  ;;  %v1233_v54 = vld [vmem:[%s1601_s0 + $0x78] sm:$0xff]  ;;  %v1238_v55 = vld [vmem:[%s1601_s0 + $0x70] sm:$0xff] }
   0x7   :  { %103 = vadd.xlane.f32.xlu1 %v102_v6  ;;  %100 = vadd.xlane.f32.xlu0 %v99_v7  ;;  %v111_v34 = vsel %vm50_vm0, %v1173_v32, 0.0  ;;  %v63_v35 = vsel %vm50_vm0, %v1178_v33, 0.0  ;;  %v114_v38 = vsel %vm50_vm0, %v1187_v36, 0.0  ;;  %v66_v39 = vsel %vm50_vm0, %v1192_v37, 0.0  ;;  %v468_v50 = vld [vmem:[%s1602_s2] sm:$0xff]  ;;  %v1259_v6 = vld [vmem:[%s1601_s0 + $0x88] sm:$0xff] }
   0x8   :  { %v249_v26 = vsel %vm50_vm0, %v229_v24, 0.0  ;;  %v185_v27 = vsel %vm50_vm0, %v165_v25, 0.0  ;;  %v252_v30 = vsel %vm50_vm0, %v230_v28, 0.0  ;;  %v188_v31 = vsel %vm50_vm0, %v166_v29, 0.0  ;;  %v467_v51 = vld [vmem:[%s1603_s1] sm:$0xff]  ;;  %981 = vmatprep.subr.mxu0 %v468_v50 }
   0x9   :  { %v231_v40 = vmul.f32 %v1173_v32, %v1173_v32  ;;  %v167_v41 = vmul.f32 %v1178_v33, %v1178_v33  ;;  %v232_v44 = vmul.f32 %v1187_v36, %v1187_v36  ;;  %v168_v45 = vmul.f32 %v1192_v37, %v1192_v37  ;;  %1007 = vmatprep.subr.mxu1 %v467_v51  ;;  %v1264_v7 = vld [vmem:[%s1601_s0 + $0x80] sm:$0xff] }
   0xa   :  { %v117_v52 = vsel %vm50_vm0, %v1213_v48, 0.0  ;;  %v69_v53 = vsel %vm50_vm0, %v1218_v49, 0.0  ;;  %982 = vmatpush3.msra.mxu0 %v468_v50  ;;  %1008 = vmatpush3.msra.mxu1 %v467_v51  ;;  %v120_v56 = vsel %vm50_vm0, %v1233_v54, 0.0  ;;  %v72_v57 = vsel %vm50_vm0, %v1238_v55, 0.0 }
   0xb   :  { %244 = vadd.xlane.f32.xlu1 %v243_v10  ;;  %180 = vadd.xlane.f32.xlu0 %v179_v11  ;;  %v255_v42 = vsel %vm50_vm0, %v231_v40, 0.0  ;;  %v191_v43 = vsel %vm50_vm0, %v167_v41, 0.0  ;;  %v258_v46 = vsel %vm50_vm0, %v232_v44, 0.0  ;;  %v194_v47 = vsel %vm50_vm0, %v168_v45, 0.0  ;;  %v1273_v10 = vld [vmem:[%s1601_s0 + $0x98] sm:$0xff]  ;;  %v1278_v11 = vld [vmem:[%s1601_s0 + $0x90] sm:$0xff] }
   0xc   :  { %v233_v58 = vmul.f32 %v1213_v48, %v1213_v48  ;;  %v169_v59 = vmul.f32 %v1218_v49, %v1218_v49  ;;  %v234_v62 = vmul.f32 %v1233_v54, %v1233_v54  ;;  %v170_v63 = vmul.f32 %v1238_v55, %v1238_v55 }
   0xd   :  { %v123_v8 = vsel %vm50_vm0, %v1259_v6, 0.0  ;;  %v75_v9 = vsel %vm50_vm0, %v1264_v7, 0.0  ;;  %v126_v12 = vsel %vm50_vm0, %v1273_v10, 0.0  ;;  %v78_v13 = vsel %vm50_vm0, %v1278_v11, 0.0 }
   0xe   :  { %v261_v60 = vsel %vm50_vm0, %v233_v58, 0.0  ;;  %v197_v61 = vsel %vm50_vm0, %v169_v59, 0.0  ;;  %v264_v3 = vsel %vm50_vm0, %v234_v62, 0.0  ;;  %v200_v4 = vsel %vm50_vm0, %v170_v63, 0.0 }
   0xf   :  { %247 = vadd.xlane.f32.xlu1 %v246_v14  ;;  %183 = vadd.xlane.f32.xlu0 %v182_v15  ;;  %v235_v14 = vmul.f32 %v1259_v6, %v1259_v6  ;;  %v171_v15 = vmul.f32 %v1264_v7, %v1264_v7 }
  0x13   :  { %106 = vadd.xlane.f32.xlu1 %v105_v18  ;;  %58 = vadd.xlane.f32.xlu0 %v57_v19  ;;  %v267_v18 = vsel %vm50_vm0, %v235_v14, 0.0  ;;  %v203_v19 = vsel %vm50_vm0, %v171_v15, 0.0  ;;  %v1393_v14 = vld [vmem:[%s1601_s0 + $0xf8] sm:$0xff]  ;;  %v1398_v15 = vld [vmem:[%s1601_s0 + $0xf0] sm:$0xff] }
  0x17   :  { %109 = vadd.xlane.f32.xlu1 %v108_v22  ;;  %61 = vadd.xlane.f32.xlu0 %v60_v23  ;;  %v236_v22 = vmul.f32 %v1273_v10, %v1273_v10  ;;  %v172_v23 = vmul.f32 %v1278_v11, %v1278_v11 }
  0x19   :  { %v270_v24 = vsel %vm50_vm0, %v236_v22, 0.0  ;;  %v206_v25 = vsel %vm50_vm0, %v172_v23, 0.0 }
  0x1b   :  { %250 = vadd.xlane.f32.xlu1 %v249_v26  ;;  %186 = vadd.xlane.f32.xlu0 %v185_v27  ;;  %v1299_v26 = vld [vmem:[%s1601_s0 + $0xa8] sm:$0xff]  ;;  %v1304_v27 = vld [vmem:[%s1601_s0 + $0xa0] sm:$0xff] }
  0x1c   :  { %v129_v28 = vsel %vm50_vm0, %v1299_v26, 0.0  ;;  %v81_v29 = vsel %vm50_vm0, %v1304_v27, 0.0 }
  0x1f   :  { %253 = vadd.xlane.f32.xlu1 %v252_v30  ;;  %189 = vadd.xlane.f32.xlu0 %v188_v31  ;;  %v1313_v30 = vld [vmem:[%s1601_s0 + $0xb8] sm:$0xff]  ;;  %v1318_v31 = vld [vmem:[%s1601_s0 + $0xb0] sm:$0xff] }
  0x23   :  { %112 = vadd.xlane.f32.xlu1 %v111_v34  ;;  %64 = vadd.xlane.f32.xlu0 %v63_v35  ;;  %v132_v34 = vsel %vm50_vm0, %v1313_v30, 0.0  ;;  %v84_v35 = vsel %vm50_vm0, %v1318_v31, 0.0 }
  0x27   :  { %115 = vadd.xlane.f32.xlu1 %v114_v38  ;;  %67 = vadd.xlane.f32.xlu0 %v66_v39  ;;  %v237_v38 = vmul.f32 %v1299_v26, %v1299_v26  ;;  %v173_v39 = vmul.f32 %v1304_v27, %v1304_v27 }
  0x29   :  { %v273_v40 = vsel %vm50_vm0, %v237_v38, 0.0  ;;  %v209_v41 = vsel %vm50_vm0, %v173_v39, 0.0 }
  0x2b   :  { %256 = vadd.xlane.f32.xlu1 %v255_v42  ;;  %192 = vadd.xlane.f32.xlu0 %v191_v43  ;;  %v238_v42 = vmul.f32 %v1313_v30, %v1313_v30  ;;  %v174_v43 = vmul.f32 %v1318_v31, %v1318_v31 }
  0x2d   :  { %v276_v44 = vsel %vm50_vm0, %v238_v42, 0.0  ;;  %v212_v45 = vsel %vm50_vm0, %v174_v43, 0.0 }
  0x2f   :  { %259 = vadd.xlane.f32.xlu1 %v258_v46  ;;  %195 = vadd.xlane.f32.xlu0 %v194_v47  ;;  %v1339_v46 = vld [vmem:[%s1601_s0 + $0xc8] sm:$0xff]  ;;  %v1344_v47 = vld [vmem:[%s1601_s0 + $0xc0] sm:$0xff] }
  0x30   :  { %v135_v50 = vsel %vm50_vm0, %v1339_v46, 0.0  ;;  %v87_v51 = vsel %vm50_vm0, %v1344_v47, 0.0  ;;  %v239_v58 = vmul.f32 %v1339_v46, %v1339_v46  ;;  %v175_v59 = vmul.f32 %v1344_v47, %v1344_v47 }
  0x33   :  { %118 = vadd.xlane.f32.xlu1 %v117_v52  ;;  %70 = vadd.xlane.f32.xlu0 %v69_v53  ;;  %v1353_v52 = vld [vmem:[%s1601_s0 + $0xd8] sm:$0xff]  ;;  %v1358_v53 = vld [vmem:[%s1601_s0 + $0xd0] sm:$0xff] }
  0x34   :  { %v240_v62 = vmul.f32 %v1353_v52, %v1353_v52  ;;  %v176_v63 = vmul.f32 %v1358_v53, %v1358_v53 }
  0x37   :  { %121 = vadd.xlane.f32.xlu1 %v120_v56  ;;  %73 = vadd.xlane.f32.xlu0 %v72_v57  ;;  %v138_v56 = vsel %vm50_vm0, %v1353_v52, 0.0  ;;  %v90_v57 = vsel %vm50_vm0, %v1358_v53, 0.0 }
  0x3b   :  { %262 = vadd.xlane.f32.xlu1 %v261_v60  ;;  %198 = vadd.xlane.f32.xlu0 %v197_v61  ;;  %v279_v60 = vsel %vm50_vm0, %v239_v58, 0.0  ;;  %v215_v61 = vsel %vm50_vm0, %v175_v59, 0.0 }
  0x3f   :  { %265 = vadd.xlane.f32.xlu1 %v264_v3  ;;  %201 = vadd.xlane.f32.xlu0 %v200_v4  ;;  %v282_v3 = vsel %vm50_vm0, %v240_v62, 0.0  ;;  %v218_v4 = vsel %vm50_vm0, %v176_v63, 0.0 }
  0x43   :  { %124 = vadd.xlane.f32.xlu1 %v123_v8  ;;  %76 = vadd.xlane.f32.xlu0 %v75_v9  ;;  %v1379_v8 = vld [vmem:[%s1601_s0 + $0xe8] sm:$0xff]  ;;  %v1384_v9 = vld [vmem:[%s1601_s0 + $0xe0] sm:$0xff] }
  0x44   :  { %v241_v22 = vmul.f32 %v1379_v8, %v1379_v8  ;;  %v177_v23 = vmul.f32 %v1384_v9, %v1384_v9 }
  0x47   :  { %127 = vadd.xlane.f32.xlu1 %v126_v12  ;;  %79 = vadd.xlane.f32.xlu0 %v78_v13  ;;  %v141_v12 = vsel %vm50_vm0, %v1379_v8, 0.0  ;;  %v93_v13 = vsel %vm50_vm0, %v1384_v9, 0.0 }
  0x4b   :  { %268 = vadd.xlane.f32.xlu1 %v267_v18  ;;  %204 = vadd.xlane.f32.xlu0 %v203_v19  ;;  %v144_v18 = vsel %vm50_vm0, %v1393_v14, 0.0  ;;  %v96_v19 = vsel %vm50_vm0, %v1398_v15, 0.0 }
  0x4f   :  { %271 = vadd.xlane.f32.xlu1 %v270_v24  ;;  %207 = vadd.xlane.f32.xlu0 %v206_v25  ;;  %v285_v24 = vsel %vm50_vm0, %v241_v22, 0.0  ;;  %v221_v25 = vsel %vm50_vm0, %v177_v23, 0.0 }
  0x53   :  { %130 = vadd.xlane.f32.xlu1 %v129_v28  ;;  %82 = vadd.xlane.f32.xlu0 %v81_v29  ;;  %v242_v28 = vmul.f32 %v1393_v14, %v1393_v14  ;;  %v178_v29 = vmul.f32 %v1398_v15, %v1398_v15 }
  0x57   :  { %133 = vadd.xlane.f32.xlu1 %v132_v34  ;;  %85 = vadd.xlane.f32.xlu0 %v84_v35  ;;  %v288_v34 = vsel %vm50_vm0, %v242_v28, 0.0  ;;  %v224_v35 = vsel %vm50_vm0, %v178_v29, 0.0 }
  0x5b   :  { %274 = vadd.xlane.f32.xlu1 %v273_v40  ;;  %210 = vadd.xlane.f32.xlu0 %v209_v41 }
  0x5f   :  { %277 = vadd.xlane.f32.xlu1 %v276_v44  ;;  %213 = vadd.xlane.f32.xlu0 %v212_v45 }
  0x63   :  { %136 = vadd.xlane.f32.xlu1 %v135_v50  ;;  %88 = vadd.xlane.f32.xlu0 %v87_v51 }
  0x67   :  { %139 = vadd.xlane.f32.xlu1 %v138_v56  ;;  %91 = vadd.xlane.f32.xlu0 %v90_v57 }
  0x6b   :  { %280 = vadd.xlane.f32.xlu1 %v279_v60  ;;  %216 = vadd.xlane.f32.xlu0 %v215_v61 }
  0x6f   :  { %283 = vadd.xlane.f32.xlu1 %v282_v3  ;;  %219 = vadd.xlane.f32.xlu0 %v218_v4 }
  0x73   :  { %142 = vadd.xlane.f32.xlu1 %v141_v12  ;;  %94 = vadd.xlane.f32.xlu0 %v93_v13 }
  0x77   :  { %145 = vadd.xlane.f32.xlu1 %v144_v18  ;;  %97 = vadd.xlane.f32.xlu0 %v96_v19 }
  0x7b   :  { %286 = vadd.xlane.f32.xlu1 %v285_v24  ;;  %222 = vadd.xlane.f32.xlu0 %v221_v25 }
  0x7f   :  { %289 = vadd.xlane.f32.xlu1 %v288_v34  ;;  %225 = vadd.xlane.f32.xlu0 %v224_v35 }
  0x8c   :  { %v56_v38 = vpop.xlane.xlu1 %55  ;;  %v53_v39 = vpop.xlane.xlu0 %52 }
  0x90   :  { %v104_v40 = vpop.xlane.xlu1 %103  ;;  %v101_v41 = vpop.xlane.xlu0 %100 }
  0x91   :  { %v147_v42 = vadd.f32 %v101_v41, %v53_v39  ;;  %v148_v43 = vadd.f32 %v104_v40, %v56_v38 }
  0x93   :  { %v307_v44 = vmul.f32 0.0625, %v147_v42  ;;  %v308_v56 = vmul.f32 0.0625, %v148_v43 }
  0x94   :  { %v245_v45 = vpop.xlane.xlu1 %244  ;;  %v181_v50 = vpop.xlane.xlu0 %180 }
  0x95   :  { %v291_v51 = vadd.f32 %v245_v45, %v181_v50  ;;  %v339_v57 = vmul.f32 %v307_v44, %v307_v44  ;;  %v340_v3 = vmul.f32 %v308_v56, %v308_v56  ;;  %v435_v50 = vsub.f32 %v1112_v5, %v307_v44 }
  0x97   :  { %v323_v58 = vmul.f32 0.0625, %v291_v51  ;;  %v403_v51 = vsub.f32 %v1098_v1, %v307_v44 }
  0x98   :  { %v248_v59 = vpop.xlane.xlu1 %247  ;;  %v184_v60 = vpop.xlane.xlu0 %183 }
  0x99   :  { %v355_v61 = vsub.f32 %v323_v58, %v339_v57  ;;  %v292_v62 = vadd.f32 %v248_v59, %v184_v60 }
  0x9b   :  { %v371_v63 = vadd.f32 1e-05, %v355_v61  ;;  %v324_v4 = vmul.f32 0.0625, %v292_v62 }
  0x9c   :  { %v107_v12 = vpop.xlane.xlu1 %106  ;;  %v59_v13 = vpop.xlane.xlu0 %58 }
  0x9d   :  { %1033 = vrsqrt.f32 %v371_v63  ;;  %v356_v18 = vsub.f32 %v324_v4, %v340_v3  ;;  %v149_v22 = vadd.f32 %v107_v12, %v59_v13  ;;  %v404_v4 = vsub.f32 %v1093_v0, %v308_v56 }
  0x9e   :  { %v436_v12 = vsub.f32 %v1103_v2, %v308_v56 }
  0x9f   :  { %v372_v19 = vadd.f32 1e-05, %v356_v18  ;;  %v309_v28 = vmul.f32 0.0625, %v149_v22 }
  0xa0   :  { %v110_v23 = vpop.xlane.xlu1 %109  ;;  %v62_v24 = vpop.xlane.xlu0 %61 }
  0xa1   :  { %1035 = vrsqrt.f32 %v372_v19  ;;  %v150_v25 = vadd.f32 %v110_v23, %v62_v24  ;;  %v341_v39 = vmul.f32 %v309_v28, %v309_v28 }
  0xa3   :  { %v1416_v38 = vmul.f32 0.0625, %v150_v25 }
  0xa4   :  { %v251_v29 = vpop.xlane.xlu1 %250  ;;  %v187_v34 = vpop.xlane.xlu0 %186 }
  0xa5   :  { %v293_v35 = vadd.f32 %v251_v29, %v187_v34  ;;  %v342_v58 = vmul.f32 %v1416_v38, %v1416_v38 }
  0xa7   :  { %v325_v40 = vmul.f32 0.0625, %v293_v35 }
  0xa8   :  { %v254_v41 = vpop.xlane.xlu1 %253  ;;  %v190_v42 = vpop.xlane.xlu0 %189 }
  0xa9   :  { %v357_v43 = vsub.f32 %v325_v40, %v341_v39  ;;  %v294_v45 = vadd.f32 %v254_v41, %v190_v42  ;;  %v405_v41 = vsub.f32 %v1138_v17, %v309_v28  ;;  %v437_v42 = vsub.f32 %v1133_v16, %v309_v28 }
  0xaa   :  { %v1034_v57 = vpop.eup %1033  ;;  %v438_v17 = vsub.f32 %v1147_v20, %v1416_v38 }
  0xab   :  { %v373_v59 = vadd.f32 1e-05, %v357_v43  ;;  %v326_v60 = vmul.f32 0.0625, %v294_v45  ;;  %v451_v61 = vmul.f32 %v1034_v57, %v435_v50  ;;  %v419_v62 = vmul.f32 %v1034_v57, %v403_v51 }
  0xac   :  { %v113_v63 = vpop.xlane.xlu1 %112  ;;  %v65_v3 = vpop.xlane.xlu0 %64 }
  0xad   :  { %1037 = vrsqrt.f32 %v373_v59  ;;  %v358_v13 = vsub.f32 %v326_v60, %v342_v58  ;;  %983 = vmatprep.mubr.msk.f32.mxu0 %vm50_vm0, %v451_v61  ;;  %1009 = vmatprep.mubr.msk.f32.mxu1 %vm50_vm0, %v419_v62  ;;  %v151_v44 = vadd.f32 %v113_v63, %v65_v3  ;;  %v406_v63 = vsub.f32 %v1152_v21, %v1416_v38 }
  0xae   :  { %v1036_v1 = vpop.eup %1035 }
  0xaf   :  { %v374_v5 = vadd.f32 1e-05, %v358_v13  ;;  %v452_v18 = vmul.f32 %v1036_v1, %v436_v12  ;;  %v420_v19 = vmul.f32 %v1036_v1, %v404_v4  ;;  %v311_v2 = vmul.f32 0.0625, %v151_v44 }
  0xb0   :  { %v116_v22 = vpop.xlane.xlu1 %115  ;;  %v68_v23 = vpop.xlane.xlu0 %67 }
  0xb1   :  { %1039 = vrsqrt.f32 %v374_v5  ;;  %984 = vmatmul.mubr.msk.f32.vlgmr.msra.gmra.mxu0 %vm50_vm0, %v452_v18  ;;  %1010 = vmatmul.mubr.msk.f32.vlgmr.msra.gmra.mxu1 %vm50_vm0, %v420_v19  ;;  %v152_v0 = vadd.f32 %v116_v22, %v68_v23  ;;  %v343_v34 = vmul.f32 %v311_v2, %v311_v2 }
  0xb3   :  { %v1428_v29 = vmul.f32 0.0625, %v152_v0 }
  0xb4   :  { %v257_v56 = vpop.xlane.xlu1 %256  ;;  %v193_v24 = vpop.xlane.xlu0 %192 }
  0xb5   :  { %v295_v25 = vadd.f32 %v257_v56, %v193_v24  ;;  %v344_v51 = vmul.f32 %v1428_v29, %v1428_v29  ;;  %v407_v24 = vsub.f32 %v1178_v33, %v311_v2  ;;  %v440_v33 = vsub.f32 %v1187_v36, %v1428_v29 }
  0xb7   :  { %v327_v35 = vmul.f32 0.0625, %v295_v25  ;;  %v439_v25 = vsub.f32 %v1173_v32, %v311_v2 }
  0xb8   :  { %v260_v39 = vpop.xlane.xlu1 %259  ;;  %v196_v40 = vpop.xlane.xlu0 %195 }
  0xb9   :  { %v359_v43 = vsub.f32 %v327_v35, %v343_v34  ;;  %v296_v45 = vadd.f32 %v260_v39, %v196_v40 }
  0xba   :  { %v1038_v50 = vpop.eup %1037 }
  0xbb   :  { %v375_v57 = vadd.f32 1e-05, %v359_v43  ;;  %v328_v58 = vmul.f32 0.0625, %v296_v45  ;;  %v453_v59 = vmul.f32 %v1038_v50, %v437_v42  ;;  %v421_v60 = vmul.f32 %v1038_v50, %v405_v41 }
  0xbc   :  { %v119_v61 = vpop.xlane.xlu1 %118  ;;  %v71_v62 = vpop.xlane.xlu0 %70 }
  0xbd   :  { %1041 = vrsqrt.f32 %v375_v57  ;;  %v360_v16 = vsub.f32 %v328_v58, %v344_v51  ;;  %986 = vmatprep.mubr.msk.f32.mxu0 %vm50_vm0, %v453_v59  ;;  %1012 = vmatprep.mubr.msk.f32.mxu1 %vm50_vm0, %v421_v60  ;;  %v153_v4 = vadd.f32 %v119_v61, %v71_v62  ;;  %v408_v57 = vsub.f32 %v1192_v37, %v1428_v29 }
  0xbe   :  { %v1040_v28 = vpop.eup %1039 }
  0xbf   :  { %v376_v3 = vadd.f32 1e-05, %v360_v16  ;;  %v454_v12 = vmul.f32 %v1040_v28, %v438_v17  ;;  %v422_v13 = vmul.f32 %v1040_v28, %v406_v63  ;;  %v313_v20 = vmul.f32 0.0625, %v153_v4 }
  0xc0   :  { %v122_v1 = vpop.xlane.xlu1 %121  ;;  %v74_v5 = vpop.xlane.xlu0 %73 }
  0xc1   :  { %1043 = vrsqrt.f32 %v376_v3  ;;  %987 = vmatmul.mubr.msk.f32.gmra.mxu0 %vm50_vm0, %v454_v12  ;;  %1013 = vmatmul.mubr.msk.f32.gmra.mxu1 %vm50_vm0, %v422_v13  ;;  %v154_v21 = vadd.f32 %v122_v1, %v74_v5  ;;  %v345_v22 = vmul.f32 %v313_v20, %v313_v20  ;;  %v409_v1 = vsub.f32 %v1218_v49, %v313_v20 }
  0xc2   :  { %v441_v5 = vsub.f32 %v1213_v48, %v313_v20 }
  0xc3   :  { %v1442_v19 = vmul.f32 0.0625, %v154_v21 }
  0xc4   :  { %v263_v38 = vpop.xlane.xlu1 %262  ;;  %v199_v44 = vpop.xlane.xlu0 %198 }
  0xc5   :  { %v297_v18 = vadd.f32 %v263_v38, %v199_v44  ;;  %v346_v40 = vmul.f32 %v1442_v19, %v1442_v19  ;;  %v442_v49 = vsub.f32 %v1233_v54, %v1442_v19 }
  0xc7   :  { %v329_v23 = vmul.f32 0.0625, %v297_v18 }
  0xc8   :  { %v266_v0 = vpop.xlane.xlu1 %265  ;;  %v202_v56 = vpop.xlane.xlu0 %201 }
  0xc9   :  { %v361_v34 = vsub.f32 %v329_v23, %v345_v22  ;;  %v298_v35 = vadd.f32 %v266_v0, %v202_v56 }
  0xca   :  { %v1042_v39 = vpop.eup %1041 }
  0xcb   :  { %v377_v41 = vadd.f32 1e-05, %v361_v34  ;;  %v330_v42 = vmul.f32 0.0625, %v298_v35  ;;  %v455_v43 = vmul.f32 %v1042_v39, %v439_v25  ;;  %v423_v45 = vmul.f32 %v1042_v39, %v407_v24 }
  0xcc   :  { %v125_v50 = vpop.xlane.xlu1 %124  ;;  %v77_v51 = vpop.xlane.xlu0 %76  ;;  %v410_v34 = vsub.f32 %v1238_v55, %v1442_v19 }
  0xcd   :  { %1045 = vrsqrt.f32 %v377_v41  ;;  %v362_v32 = vsub.f32 %v330_v42, %v346_v40  ;;  %989 = vmatprep.mubr.msk.f32.mxu0 %vm50_vm0, %v455_v43  ;;  %1015 = vmatprep.mubr.msk.f32.mxu1 %vm50_vm0, %v423_v45  ;;  %v155_v59 = vadd.f32 %v125_v50, %v77_v51 }
  0xce   :  { %v1044_v2 = vpop.eup %1043 }
  0xcf   :  { %v378_v58 = vadd.f32 1e-05, %v362_v32  ;;  %v456_v60 = vmul.f32 %v1044_v2, %v440_v33  ;;  %v424_v61 = vmul.f32 %v1044_v2, %v408_v57  ;;  %v315_v36 = vmul.f32 0.0625, %v155_v59 }
  0xd0   :  { %v128_v62 = vpop.xlane.xlu1 %127  ;;  %v80_v63 = vpop.xlane.xlu0 %79 }
  0xd1   :  { %1047 = vrsqrt.f32 %v378_v58  ;;  %990 = vmatmul.mubr.msk.f32.gmra.mxu0 %vm50_vm0, %v456_v60  ;;  %1016 = vmatmul.mubr.msk.f32.gmra.mxu1 %vm50_vm0, %v424_v61  ;;  %v156_v37 = vadd.f32 %v128_v62, %v80_v63  ;;  %v347_v3 = vmul.f32 %v315_v36, %v315_v36  ;;  %v411_v58 = vsub.f32 %v1264_v7, %v315_v36 }
  0xd2   :  { %v443_v59 = vsub.f32 %v1259_v6, %v315_v36 }
  0xd3   :  { %v1456_v28 = vmul.f32 0.0625, %v156_v37 }
  0xd4   :  { %v269_v29 = vpop.xlane.xlu1 %268  ;;  %v205_v17 = vpop.xlane.xlu0 %204 }
  0xd5   :  { %v299_v16 = vadd.f32 %v269_v29, %v205_v17  ;;  %v348_v18 = vmul.f32 %v1456_v28, %v1456_v28  ;;  %v444_v7 = vsub.f32 %v1273_v10, %v1456_v28 }
  0xd7   :  { %v331_v4 = vmul.f32 0.0625, %v299_v16 }
  0xd8   :  { %v272_v12 = vpop.xlane.xlu1 %271  ;;  %v208_v13 = vpop.xlane.xlu0 %207 }
  0xd9   :  { %v363_v21 = vsub.f32 %v331_v4, %v347_v3  ;;  %v300_v38 = vadd.f32 %v272_v12, %v208_v13  ;;  %v412_v12 = vsub.f32 %v1278_v11, %v1456_v28 }
  0xda   :  { %v1046_v44 = vpop.eup %1045 }
  0xdb   :  { %v379_v22 = vadd.f32 1e-05, %v363_v21  ;;  %v332_v23 = vmul.f32 0.0625, %v300_v38  ;;  %v457_v0 = vmul.f32 %v1046_v44, %v441_v5  ;;  %v425_v56 = vmul.f32 %v1046_v44, %v409_v1 }
  0xdc   :  { %v131_v24 = vpop.xlane.xlu1 %130  ;;  %v83_v25 = vpop.xlane.xlu0 %82 }
  0xdd   :  { %1049 = vrsqrt.f32 %v379_v22  ;;  %v364_v48 = vsub.f32 %v332_v23, %v348_v18  ;;  %992 = vmatprep.mubr.msk.f32.mxu0 %vm50_vm0, %v457_v0  ;;  %1018 = vmatprep.mubr.msk.f32.mxu1 %vm50_vm0, %v425_v56  ;;  %v157_v39 = vadd.f32 %v131_v24, %v83_v25 }
  0xde   :  { %v1048_v20 = vpop.eup %1047 }
  0xdf   :  { %v380_v35 = vadd.f32 1e-05, %v364_v48  ;;  %v458_v40 = vmul.f32 %v1048_v20, %v442_v49  ;;  %v426_v41 = vmul.f32 %v1048_v20, %v410_v34  ;;  %v317_v54 = vmul.f32 0.0625, %v157_v39 }
  0xe0   :  { %v134_v42 = vpop.xlane.xlu1 %133  ;;  %v86_v43 = vpop.xlane.xlu0 %85 }
  0xe1   :  { %1051 = vrsqrt.f32 %v380_v35  ;;  %993 = vmatmul.mubr.msk.f32.gmra.mxu0 %vm50_vm0, %v458_v40  ;;  %1019 = vmatmul.mubr.msk.f32.gmra.mxu1 %vm50_vm0, %v426_v41  ;;  %v158_v55 = vadd.f32 %v134_v42, %v86_v43  ;;  %v349_v57 = vmul.f32 %v317_v54, %v317_v54  ;;  %v413_v34 = vsub.f32 %v1304_v27, %v317_v54 }
  0xe2   :  { %v445_v49 = vsub.f32 %v1299_v26, %v317_v54 }
  0xe3   :  { %v1470_v51 = vmul.f32 0.0625, %v158_v55 }
  0xe4   :  { %v275_v19 = vpop.xlane.xlu1 %274  ;;  %v211_v45 = vpop.xlane.xlu0 %210 }
  0xe5   :  { %v301_v50 = vadd.f32 %v275_v19, %v211_v45  ;;  %v350_v63 = vmul.f32 %v1470_v51, %v1470_v51  ;;  %v414_v45 = vsub.f32 %v1318_v31, %v1470_v51  ;;  %v446_v27 = vsub.f32 %v1313_v30, %v1470_v51 }
  0xe7   :  { %v333_v33 = vmul.f32 0.0625, %v301_v50 }
  0xe8   :  { %v278_v32 = vpop.xlane.xlu1 %277  ;;  %v214_v2 = vpop.xlane.xlu0 %213 }
  0xe9   :  { %v365_v60 = vsub.f32 %v333_v33, %v349_v57  ;;  %v302_v61 = vadd.f32 %v278_v32, %v214_v2 }
  0xea   :  { %v1050_v62 = vpop.eup %1049 }
  0xeb   :  { %v381_v37 = vadd.f32 1e-05, %v365_v60  ;;  %v334_v29 = vmul.f32 0.0625, %v302_v61  ;;  %v459_v17 = vmul.f32 %v1050_v62, %v443_v59  ;;  %v427_v16 = vmul.f32 %v1050_v62, %v411_v58 }
  0xec   :  { %v137_v3 = vpop.xlane.xlu1 %136  ;;  %v89_v4 = vpop.xlane.xlu0 %88 }
  0xed   :  { %1053 = vrsqrt.f32 %v381_v37  ;;  %v366_v6 = vsub.f32 %v334_v29, %v350_v63  ;;  %995 = vmatprep.mubr.msk.f32.mxu0 %vm50_vm0, %v459_v17  ;;  %1021 = vmatprep.mubr.msk.f32.mxu1 %vm50_vm0, %v427_v16  ;;  %v159_v1 = vadd.f32 %v137_v3, %v89_v4 }
  0xee   :  { %v1052_v36 = vpop.eup %1051 }
  0xef   :  { %v382_v13 = vadd.f32 1e-05, %v366_v6  ;;  %v460_v5 = vmul.f32 %v1052_v36, %v444_v7  ;;  %v428_v21 = vmul.f32 %v1052_v36, %v412_v12  ;;  %v319_v10 = vmul.f32 0.0625, %v159_v1 }
  0xf0   :  { %v140_v38 = vpop.xlane.xlu1 %139  ;;  %v92_v44 = vpop.xlane.xlu0 %91 }
  0xf1   :  { %1055 = vrsqrt.f32 %v382_v13  ;;  %996 = vmatmul.mubr.msk.f32.gmra.mxu0 %vm50_vm0, %v460_v5  ;;  %1022 = vmatmul.mubr.msk.f32.gmra.mxu1 %vm50_vm0, %v428_v21  ;;  %v160_v11 = vadd.f32 %v140_v38, %v92_v44  ;;  %v351_v0 = vmul.f32 %v319_v10, %v319_v10  ;;  %v415_v17 = vsub.f32 %v1344_v47, %v319_v10 }
  0xf2   :  { %v447_v16 = vsub.f32 %v1339_v46, %v319_v10 }
  0xf3   :  { %v1484_v23 = vmul.f32 0.0625, %v160_v11 }
  0xf4   :  { %v281_v28 = vpop.xlane.xlu1 %280  ;;  %v217_v18 = vpop.xlane.xlu0 %216 }
  0xf5   :  { %v303_v22 = vadd.f32 %v281_v28, %v217_v18  ;;  %v352_v39 = vmul.f32 %v1484_v23, %v1484_v23  ;;  %v416_v5 = vsub.f32 %v1358_v53, %v1484_v23  ;;  %v448_v21 = vsub.f32 %v1353_v52, %v1484_v23 }
  0xf7   :  { %v335_v56 = vmul.f32 0.0625, %v303_v22 }
  0xf8   :  { %v284_v24 = vpop.xlane.xlu1 %283  ;;  %v220_v25 = vpop.xlane.xlu0 %219 }
  0xf9   :  { %v367_v48 = vsub.f32 %v335_v56, %v351_v0  ;;  %v304_v20 = vadd.f32 %v284_v24, %v220_v25  ;;  %v1519_v25 = vld [vmem:[%s1604_s3] ss:$0 sm:$0xff] }
  0xfa   :  { %v1054_v35 = vpop.eup %1053 }
  0xfb   :  { %v383_v40 = vadd.f32 1e-05, %v367_v48  ;;  %v336_v41 = vmul.f32 0.0625, %v304_v20  ;;  %v461_v42 = vmul.f32 %v1054_v35, %v445_v49  ;;  %v429_v43 = vmul.f32 %v1054_v35, %v413_v34 }
  0xfc   :  { %v143_v55 = vpop.xlane.xlu1 %142  ;;  %v95_v19 = vpop.xlane.xlu0 %94 }
  0xfd   :  { %1057 = vrsqrt.f32 %v383_v40  ;;  %v368_v26 = vsub.f32 %v336_v41, %v352_v39  ;;  %998 = vmatprep.mubr.msk.f32.mxu0 %vm50_vm0, %v461_v42  ;;  %1024 = vmatprep.mubr.msk.f32.mxu1 %vm50_vm0, %v429_v43  ;;  %v161_v57 = vadd.f32 %v143_v55, %v95_v19 }
  0xfe   :  { %v1056_v54 = vpop.eup %1055 }
  0xff   :  { %v384_v50 = vadd.f32 1e-05, %v368_v26  ;;  %v462_v33 = vmul.f32 %v1056_v54, %v446_v27  ;;  %v430_v32 = vmul.f32 %v1056_v54, %v414_v45  ;;  %v321_v30 = vmul.f32 0.0625, %v161_v57 }
 0x100   :  { %v146_v2 = vpop.xlane.xlu1 %145  ;;  %v98_v58 = vpop.xlane.xlu0 %97 }
 0x101   :  { %1059 = vrsqrt.f32 %v384_v50  ;;  %999 = vmatmul.mubr.msk.f32.gmra.mxu0 %vm50_vm0, %v462_v33  ;;  %1025 = vmatmul.mubr.msk.f32.gmra.mxu1 %vm50_vm0, %v430_v32  ;;  %v162_v31 = vadd.f32 %v146_v2, %v98_v58  ;;  %v353_v62 = vmul.f32 %v321_v30, %v321_v30  ;;  %v417_v53 = vsub.f32 %v1384_v9, %v321_v30 }
 0x102   :  { %v449_v10 = vsub.f32 %v1379_v8, %v321_v30 }
 0x103   :  { %v322_v61 = vmul.f32 0.0625, %v162_v31 }
 0x104   :  { %v287_v51 = vpop.xlane.xlu1 %286  ;;  %v223_v59 = vpop.xlane.xlu0 %222 }
 0x105   :  { %v305_v60 = vadd.f32 %v287_v51, %v223_v59  ;;  %v354_v7 = vmul.f32 %v322_v61, %v322_v61  ;;  %v418_v22 = vsub.f32 %v1398_v15, %v322_v61  ;;  %v450_v23 = vsub.f32 %v1393_v14, %v322_v61 }
 0x107   :  { %v337_v63 = vmul.f32 0.0625, %v305_v60 }
 0x108   :  { %v290_v37 = vpop.xlane.xlu1 %289  ;;  %v226_v29 = vpop.xlane.xlu0 %225 }
 0x109   :  { %v369_v3 = vsub.f32 %v337_v63, %v353_v62  ;;  %v306_v4 = vadd.f32 %v290_v37, %v226_v29 }
 0x10a   :  { %v1058_v12 = vpop.eup %1057 }
 0x10b   :  { %v385_v6 = vadd.f32 1e-05, %v369_v3  ;;  %v338_v36 = vmul.f32 0.0625, %v306_v4  ;;  %v463_v13 = vmul.f32 %v1058_v12, %v447_v16  ;;  %v431_v1 = vmul.f32 %v1058_v12, %v415_v17 }
 0x10d   :  { %1061 = vrsqrt.f32 %v385_v6  ;;  %v370_v38 = vsub.f32 %v338_v36, %v354_v7  ;;  %1001 = vmatprep.mubr.msk.f32.mxu0 %vm50_vm0, %v463_v13  ;;  %1027 = vmatprep.mubr.msk.f32.mxu1 %vm50_vm0, %v431_v1 }
 0x10e   :  { %v1060_v46 = vpop.eup %1059 }
 0x10f   :  { %v386_v47 = vadd.f32 1e-05, %v370_v38  ;;  %v464_v44 = vmul.f32 %v1060_v46, %v448_v21  ;;  %v432_v11 = vmul.f32 %v1060_v46, %v416_v5 }
 0x111   :  { %1063 = vrsqrt.f32 %v386_v47  ;;  %1002 = vmatmul.mubr.msk.f32.gmra.mxu0 %vm50_vm0, %v464_v44  ;;  %1028 = vmatmul.mubr.msk.f32.gmra.mxu1 %vm50_vm0, %v432_v11 }
 0x11a   :  { %v1062_v52 = vpop.eup %1061 }
 0x11b   :  { %v465_v28 = vmul.f32 %v1062_v52, %v449_v10  ;;  %v433_v18 = vmul.f32 %v1062_v52, %v417_v53 }
 0x11d   :  { %1004 = vmatprep.mubr.msk.f32.mxu0 %vm50_vm0, %v465_v28  ;;  %1030 = vmatprep.mubr.msk.f32.mxu1 %vm50_vm0, %v433_v18 }
 0x11e   :  { %v1064_v0 = vpop.eup %1063 }
 0x11f   :  { %v466_v56 = vmul.f32 %v1064_v0, %v450_v23  ;;  %v434_v24 = vmul.f32 %v1064_v0, %v418_v22 }
 0x121   :  { %1005 = vmatmul.mubr.msk.f32.gmra.mxu0 %vm50_vm0, %v466_v56  ;;  %1031 = vmatmul.mubr.msk.f32.gmra.mxu1 %vm50_vm0, %v434_v24 }
 0x171   :  { %v985_v9 = vpop.f32.mrf.mxu0  ;;  %v1011_v8 = vpop.f32.mrf.mxu1 }
 0x172   :  { %v782_v15 = vadd.f32 %v1011_v8, %v985_v9 }
 0x173   :  { %v583_v14 = vpop.f32.mrf.mxu0  ;;  %v776_v34 = vpop.f32.mrf.mxu1 }
 0x174   :  { %v863_v49 = vadd.f32 %v1519_v25, %v782_v15  ;;  %v777_v48 = vadd.f32 %v776_v34, %v583_v14 }
 0x176   :  { %879 = vst.msk [vmem:[%s1605_s4 + $0x8] sm:$0xff] %vm50_vm0, %v863_v49  ;;  %v862_v20 = vadd.f32 %v1519_v25, %v777_v48 }
 0x178   :  { %878 = vst.msk [vmem:[%s1605_s4] sm:$0xff] %vm50_vm0, %v862_v20 }
 0x181   :  { %v988_v35 = vpop.f32.mrf.mxu0  ;;  %v1014_v39 = vpop.f32.mrf.mxu1 }
 0x182   :  { %v792_v40 = vadd.f32 %v1014_v39, %v988_v35 }
 0x183   :  { %v593_v41 = vpop.f32.mrf.mxu0  ;;  %v786_v42 = vpop.f32.mrf.mxu1 }
 0x184   :  { %v865_v43 = vadd.f32 %v1519_v25, %v792_v40  ;;  %v787_v55 = vadd.f32 %v786_v42, %v593_v41 }
 0x186   :  { %881 = vst.msk [vmem:[%s1605_s4 + $0x18] sm:$0xff] %vm50_vm0, %v865_v43  ;;  %v864_v19 = vadd.f32 %v1519_v25, %v787_v55 }
 0x188   :  { %880 = vst.msk [vmem:[%s1605_s4 + $0x10] sm:$0xff] %vm50_vm0, %v864_v19 }
 0x191   :  { %v991_v45 = vpop.f32.mrf.mxu0  ;;  %v1017_v27 = vpop.f32.mrf.mxu1 }
 0x192   :  { %v802_v26 = vadd.f32 %v1017_v27, %v991_v45 }
 0x193   :  { %v603_v54 = vpop.f32.mrf.mxu0  ;;  %v796_v50 = vpop.f32.mrf.mxu1 }
 0x194   :  { %v867_v57 = vadd.f32 %v1519_v25, %v802_v26  ;;  %v797_v33 = vadd.f32 %v796_v50, %v603_v54 }
 0x196   :  { %883 = vst.msk [vmem:[%s1605_s4 + $0x28] sm:$0xff] %vm50_vm0, %v867_v57  ;;  %v866_v32 = vadd.f32 %v1519_v25, %v797_v33 }
 0x198   :  { %882 = vst.msk [vmem:[%s1605_s4 + $0x20] sm:$0xff] %vm50_vm0, %v866_v32 }
 0x1a1   :  { %v994_v2 = vpop.f32.mrf.mxu0  ;;  %v1020_v58 = vpop.f32.mrf.mxu1 }
 0x1a2   :  { %v812_v31 = vadd.f32 %v1020_v58, %v994_v2 }
 0x1a3   :  { %v613_v30 = vpop.f32.mrf.mxu0  ;;  %v806_v51 = vpop.f32.mrf.mxu1 }
 0x1a4   :  { %v869_v59 = vadd.f32 %v1519_v25, %v812_v31  ;;  %v807_v60 = vadd.f32 %v806_v51, %v613_v30 }
 0x1a6   :  { %885 = vst.msk [vmem:[%s1605_s4 + $0x38] sm:$0xff] %vm50_vm0, %v869_v59  ;;  %v868_v61 = vadd.f32 %v1519_v25, %v807_v60 }
 0x1a8   :  { %884 = vst.msk [vmem:[%s1605_s4 + $0x30] sm:$0xff] %vm50_vm0, %v868_v61 }
 0x1b1   :  { %v997_v62 = vpop.f32.mrf.mxu0  ;;  %v1023_v63 = vpop.f32.mrf.mxu1 }
 0x1b2   :  { %v822_v37 = vadd.f32 %v1023_v63, %v997_v62 }
 0x1b3   :  { %v623_v29 = vpop.f32.mrf.mxu0  ;;  %v816_v17 = vpop.f32.mrf.mxu1 }
 0x1b4   :  { %v871_v16 = vadd.f32 %v1519_v25, %v822_v37  ;;  %v817_v3 = vadd.f32 %v816_v17, %v623_v29 }
 0x1b6   :  { %887 = vst.msk [vmem:[%s1605_s4 + $0x48] sm:$0xff] %vm50_vm0, %v871_v16  ;;  %v870_v4 = vadd.f32 %v1519_v25, %v817_v3 }
 0x1b8   :  { %886 = vst.msk [vmem:[%s1605_s4 + $0x40] sm:$0xff] %vm50_vm0, %v870_v4 }
 0x1c1   :  { %v1000_v12 = vpop.f32.mrf.mxu0  ;;  %v1026_v7 = vpop.f32.mrf.mxu1 }
 0x1c2   :  { %v832_v6 = vadd.f32 %v1026_v7, %v1000_v12 }
 0x1c3   :  { %v633_v36 = vpop.f32.mrf.mxu0  ;;  %v826_v13 = vpop.f32.mrf.mxu1 }
 0x1c4   :  { %v873_v1 = vadd.f32 %v1519_v25, %v832_v6  ;;  %v827_v5 = vadd.f32 %v826_v13, %v633_v36 }
 0x1c6   :  { %889 = vst.msk [vmem:[%s1605_s4 + $0x58] sm:$0xff] %vm50_vm0, %v873_v1  ;;  %v872_v21 = vadd.f32 %v1519_v25, %v827_v5 }
 0x1c8   :  { %888 = vst.msk [vmem:[%s1605_s4 + $0x50] sm:$0xff] %vm50_vm0, %v872_v21 }
 0x1d1   :  { %v1003_v38 = vpop.f32.mrf.mxu0  ;;  %v1029_v46 = vpop.f32.mrf.mxu1 }
 0x1d2   :  { %v842_v47 = vadd.f32 %v1029_v46, %v1003_v38 }
 0x1d3   :  { %v643_v44 = vpop.f32.mrf.mxu0  ;;  %v836_v11 = vpop.f32.mrf.mxu1 }
 0x1d4   :  { %v875_v53 = vadd.f32 %v1519_v25, %v842_v47  ;;  %v837_v10 = vadd.f32 %v836_v11, %v643_v44 }
 0x1d6   :  { %891 = vst.msk [vmem:[%s1605_s4 + $0x68] sm:$0xff] %vm50_vm0, %v875_v53  ;;  %v874_v52 = vadd.f32 %v1519_v25, %v837_v10 }
 0x1d8   :  { %890 = vst.msk [vmem:[%s1605_s4 + $0x60] sm:$0xff] %vm50_vm0, %v874_v52 }
 0x1e1   :  { %v1006_v28 = vpop.f32.mrf.mxu0  ;;  %v1032_v18 = vpop.f32.mrf.mxu1 }
 0x1e2   :  { %v852_v22 = vadd.f32 %v1032_v18, %v1006_v28 }
 0x1e3   :  { %v653_v23 = vpop.f32.mrf.mxu0  ;;  %v846_v0 = vpop.f32.mrf.mxu1 }
 0x1e4   :  { %v877_v56 = vadd.f32 %v1519_v25, %v852_v22  ;;  %v847_v24 = vadd.f32 %v846_v0, %v653_v23 }
 0x1e6   :  { %893 = vst.msk [vmem:[%s1605_s4 + $0x78] sm:$0xff] %vm50_vm0, %v877_v56  ;;  %v876_v9 = vadd.f32 %v1519_v25, %v847_v24 }
 0x1e8   :  { %892 = vst.msk [vmem:[%s1605_s4 + $0x70] sm:$0xff] %vm50_vm0, %v876_v9 }

</bundles_post_ra>
